<compile_context>
chip_gen: v6e
topology: v6e:2x2x1
jax: 0.10.0
libtpu: 0.0.40
codegen_flags: <defaults>
</compile_context>

<pallas_src>
import jax
import jax.numpy as jnp
from jax.experimental import pallas as pl
from jax.experimental.pallas import tpu as pltpu

INPUT_DIM = 28 * 28     # 784 (8-aligned: 98 * 8)
HIDDEN_DIM = 256
LATENT_DIM = 2
HEAD_W = 128            # packed mu|logvar head width: mu at lanes 0:2, logvar at lanes 2:4


def _round_up(v, m):
    return (v + m - 1) // m * m


def _vae_kernel(x_ref, eps_ref,
                w1_ref, b1_ref,
                w2_ref, b2_ref,
                wh_ref, bh_ref,
                wd1_ref, bd1_ref,
                wd2_ref, bd2_ref,
                wd3_ref, bd3_ref,
                xhat_ref, head_ref):
    """Fused VAE forward for one (TB, .) batch tile.

    Big matmul weights are bf16 (MXU); accumulation and all elementwise math in f32.
    mu|logvar packed into one 128-lane head (mu lanes 0:2, logvar lanes 2:4)."""
    x = x_ref[...].astype(jnp.bfloat16)                               # (TB, 784)

    # ---- encoder ----
    h = jnp.dot(x, w1_ref[...], preferred_element_type=jnp.float32) + b1_ref[...]
    h = jnp.maximum(h, 0.0)                                           # ReLU
    h = jnp.dot(h.astype(jnp.bfloat16), w2_ref[...],
                preferred_element_type=jnp.float32) + b2_ref[...]
    h = jnp.maximum(h, 0.0)                                           # ReLU

    head = jnp.dot(h.astype(jnp.bfloat16), wh_ref[...],
                   preferred_element_type=jnp.float32) + bh_ref[...]  # (TB, 128)
    head_ref[...] = head                                              # lane-dense 128-wide store

    # ---- reparameterize: z = mu + eps * exp(0.5 * logvar) ----
    mu = head[:, 0:LATENT_DIM]                                        # (TB, 2)
    logvar = head[:, LATENT_DIM:2 * LATENT_DIM]                       # (TB, 2)
    z = mu + eps_ref[...] * jnp.exp(0.5 * logvar)                     # (TB, 2) f32

    # ---- decoder ----
    # First layer has K == latent_dim == 2: two VPU broadcast FMAs instead of a
    # degenerate MXU pass.  wd1 is (2, 256) f32.
    wd1 = wd1_ref[...]
    d = (z[:, 0:1] * wd1[0:1, :] + z[:, 1:2] * wd1[1:2, :]) + bd1_ref[...]   # (TB, 256)
    d = jnp.maximum(d, 0.0)                                           # ReLU
    d = jnp.dot(d.astype(jnp.bfloat16), wd2_ref[...],
                preferred_element_type=jnp.float32) + bd2_ref[...]
    d = jnp.maximum(d, 0.0)                                           # ReLU
    logits = jnp.dot(d.astype(jnp.bfloat16), wd3_ref[...],
                     preferred_element_type=jnp.float32) + bd3_ref[...]      # (TB, 784)

    # Sigmoid as 1 / (1 + exp(-x)): exp + approximate reciprocal both live on the EUP.
    xhat = pl.reciprocal(1.0 + jnp.exp(-logits), approx=True)
    xhat_ref[...] = xhat.astype(xhat_ref.dtype)                       # bf16 store


@jax.jit
def vae_forward(x, eps, params):
    """Fused VAE forward.

    x:   [B, 784] float32 (flattened MNIST-style images)
    eps: [B, 2]   float32 standard-normal noise (torch.randn_like(std) equivalent,
                  passed explicitly for determinism).
    Returns (x_hat [B, 784] bfloat16, mu [B, 2] f32, logvar [B, 2] f32).
    """
    B = x.shape[0]

    # Big tiles amortize the ~0.35 us/grid-step overhead; keep the grid length >= 2
    # for large batches so both v7x TensorCores get work under "parallel".
    if B >= 2048:
        TB = 512
    elif B >= 512:
        TB = 256
    else:
        TB = max(8, _round_up(B, 8))
    grid = (pl.cdiv(B, TB),)

    def tile_spec(d):        # batch-tiled activations / outputs
        return pl.BlockSpec((TB, d), lambda i: (i, 0))

    def weight_spec(shape):  # whole array, constant index map -> VMEM-resident across steps
        return pl.BlockSpec(shape, lambda i: (0, 0))

    in_specs = [
        tile_spec(INPUT_DIM),                         # x      (TB, 784) f32
        tile_spec(LATENT_DIM),                        # eps    (TB, 2)   f32
        weight_spec((INPUT_DIM, HIDDEN_DIM)),         # w1 (bf16)
        weight_spec((1, HIDDEN_DIM)),                 # b1
        weight_spec((HIDDEN_DIM, HIDDEN_DIM)),        # w2 (bf16)
        weight_spec((1, HIDDEN_DIM)),                 # b2
        weight_spec((HIDDEN_DIM, HEAD_W)),            # w_head (packed mu|logvar, bf16)
        weight_spec((1, HEAD_W)),                     # b_head
        weight_spec((LATENT_DIM, HIDDEN_DIM)),        # wd1 (f32, tiny — VPU path)
        weight_spec((1, HIDDEN_DIM)),                 # bd1
        weight_spec((HIDDEN_DIM, HIDDEN_DIM)),        # wd2 (bf16)
        weight_spec((1, HIDDEN_DIM)),                 # bd2
        weight_spec((HIDDEN_DIM, INPUT_DIM)),         # wd3 (bf16)
        weight_spec((1, INPUT_DIM)),                  # bd3
    ]
    out_specs = (tile_spec(INPUT_DIM), tile_spec(HEAD_W))
    out_shapes = (
        jax.ShapeDtypeStruct((B, INPUT_DIM), jnp.bfloat16),   # x_hat
        jax.ShapeDtypeStruct((B, HEAD_W), jnp.float32),       # packed mu|logvar
    )

    x_hat, head = pl.pallas_call(
        _vae_kernel,
        grid=grid,
        in_specs=in_specs,
        out_specs=out_specs,
        out_shape=out_shapes,
        compiler_params=pltpu.CompilerParams(
            dimension_semantics=("parallel",),
            vmem_limit_bytes=32 << 20,
        ),
    )(
        x, eps,
        params["w1"], params["b1"],
        params["w2"], params["b2"],
        params["wh"], params["bh"],
        params["wd1"], params["bd1"],
        params["wd2"], params["bd2"],
        params["wd3"], params["bd3"],
    )

    mu = head[:, :LATENT_DIM]
    logvar = head[:, LATENT_DIM:2 * LATENT_DIM]
    return x_hat, mu, logvar


# ---------------------------------------------------------------------------
# Parameter construction (PyTorch-style init) + packing into kernel layout.
# ---------------------------------------------------------------------------

def _linear_init(key, fan_in, fan_out):
    """PyTorch default Linear init: U(-1/sqrt(fan_in), 1/sqrt(fan_in)).
    W stored transposed vs torch ([in, out]); b as [1, out]."""
    bound = 1.0 / jnp.sqrt(jnp.float32(fan_in))
    kw, kb = jax.random.split(key)
    w = jax.random.uniform(kw, (fan_in, fan_out), jnp.float32, -bound, bound)
    b = jax.random.uniform(kb, (1, fan_out), jnp.float32, -bound, bound)
    return w, b


def init_raw_params(key):
    keys = jax.random.split(key, 7)
    raw = {}
    raw["w1"], raw["b1"] = _linear_init(keys[0], INPUT_DIM, HIDDEN_DIM)      # fc1
    raw["w2"], raw["b2"] = _linear_init(keys[1], HIDDEN_DIM, HIDDEN_DIM)     # fc2
    raw["wmu"], raw["bmu"] = _linear_init(keys[2], HIDDEN_DIM, LATENT_DIM)   # fc_mu
    raw["wlv"], raw["blv"] = _linear_init(keys[3], HIDDEN_DIM, LATENT_DIM)   # fc_logvar
    raw["wd1"], raw["bd1"] = _linear_init(keys[4], LATENT_DIM, HIDDEN_DIM)   # decoder[0]
    raw["wd2"], raw["bd2"] = _linear_init(keys[5], HIDDEN_DIM, HIDDEN_DIM)   # decoder[2]
    raw["wd3"], raw["bd3"] = _linear_init(keys[6], HIDDEN_DIM, INPUT_DIM)    # decoder[4]
    return raw


def pack_params(raw):
    """Pack raw f32 weights into the kernel layout: bf16 MXU weights, packed 128-lane head."""
    bf16 = jnp.bfloat16

    # Packed mu|logvar head: (256, 128); mu at lanes 0:2, logvar at lanes 2:4, rest zero.
    wh = jnp.zeros((HIDDEN_DIM, HEAD_W), jnp.float32)
    wh = wh.at[:, :LATENT_DIM].set(raw["wmu"])
    wh = wh.at[:, LATENT_DIM:2 * LATENT_DIM].set(raw["wlv"])
    bh = jnp.zeros((1, HEAD_W), jnp.float32)
    bh = bh.at[:, :LATENT_DIM].set(raw["bmu"])
    bh = bh.at[:, LATENT_DIM:2 * LATENT_DIM].set(raw["blv"])

    return {
        "w1": raw["w1"].astype(bf16), "b1": raw["b1"],
        "w2": raw["w2"].astype(bf16), "b2": raw["b2"],
        "wh": wh.astype(bf16), "bh": bh,
        "wd1": raw["wd1"], "bd1": raw["bd1"],             # (2, 256) f32 — VPU path
        "wd2": raw["wd2"].astype(bf16), "bd2": raw["bd2"],
        "wd3": raw["wd3"].astype(bf16), "bd3": raw["bd3"],
    }


def vae_reference(x, eps, raw):
    """Pure-JAX f32 reference matching the PyTorch module."""
    h = jax.nn.relu(x @ raw["w1"] + raw["b1"])
    h = jax.nn.relu(h @ raw["w2"] + raw["b2"])
    mu = h @ raw["wmu"] + raw["bmu"]
    logvar = h @ raw["wlv"] + raw["blv"]
    z = mu + eps * jnp.exp(0.5 * logvar)
    d = jax.nn.relu(z @ raw["wd1"] + raw["bd1"])
    d = jax.nn.relu(d @ raw["wd2"] + raw["bd2"])
    x_hat = jax.nn.sigmoid(d @ raw["wd3"] + raw["bd3"])
    return x_hat, mu, logvar


if __name__ == "__main__":
    key = jax.random.PRNGKey(0)
    k_params, k_x, k_eps = jax.random.split(key, 3)

    raw = init_raw_params(k_params)
    params = pack_params(raw)

    B = 8
    # Synthetic "MNIST" batch: values in [0, 1], flattened to [B, 784].
    x = jax.random.uniform(k_x, (B, INPUT_DIM), jnp.float32, 0.0, 1.0)
    eps = jax.random.normal(k_eps, (B, LATENT_DIM), jnp.float32)

    x_hat, mu, logvar = vae_forward(x, eps, params)
    jax.block_until_ready((x_hat, mu, logvar))

    assert x_hat.shape == (B, INPUT_DIM)
    assert mu.shape == (B, LATENT_DIM)
    assert logvar.shape == (B, LATENT_DIM)

    # Loose numerical check vs. f32 reference (kernel uses bf16 weights / bf16 x_hat).
    x_hat_ref, mu_ref, logvar_ref = vae_reference(x, eps, raw)
    assert float(jnp.max(jnp.abs(x_hat.astype(jnp.float32) - x_hat_ref))) < 5e-2
    assert float(jnp.max(jnp.abs(mu - mu_ref))) < 5e-2
    assert float(jnp.max(jnp.abs(logvar - logvar_ref))) < 5e-2

    print("KERNEL_OK")
</pallas_src>

<mosaic_0001>
module attributes {stable_mosaic.version = 11 : i64} {
  func.func @_vae_kernel(%arg0: i32, %arg1: memref<8x784xf32, #tpu.memory_space<vmem>>, %arg2: memref<8x2xf32, #tpu.memory_space<vmem>>, %arg3: memref<784x256xbf16, #tpu.memory_space<vmem>>, %arg4: memref<1x256xf32, #tpu.memory_space<vmem>>, %arg5: memref<256x256xbf16, #tpu.memory_space<vmem>>, %arg6: memref<1x256xf32, #tpu.memory_space<vmem>>, %arg7: memref<256x128xbf16, #tpu.memory_space<vmem>>, %arg8: memref<1x128xf32, #tpu.memory_space<vmem>>, %arg9: memref<2x256xf32, #tpu.memory_space<vmem>>, %arg10: memref<1x256xf32, #tpu.memory_space<vmem>>, %arg11: memref<256x256xbf16, #tpu.memory_space<vmem>>, %arg12: memref<1x256xf32, #tpu.memory_space<vmem>>, %arg13: memref<256x784xbf16, #tpu.memory_space<vmem>>, %arg14: memref<1x784xf32, #tpu.memory_space<vmem>>, %arg15: memref<8x784xbf16, #tpu.memory_space<vmem>>, %arg16: memref<8x128xf32, #tpu.memory_space<vmem>>) attributes {dimension_semantics = [#tpu.dimension_semantics<parallel>], iteration_bounds = array<i64: 1>, scalar_prefetch = 0 : i64, scratch_operands = 0 : i64, tpu.core_type = #tpu.core_type<tc>, window_params = [{transform_indices = @transform_0, window_bounds = array<i64: 8, 784>}, {transform_indices = @transform_1, window_bounds = array<i64: 8, 2>}, {pipeline_mode = #tpu.pipeline_mode<synchronous>, transform_indices = @transform_2, window_bounds = array<i64: 784, 256>}, {pipeline_mode = #tpu.pipeline_mode<synchronous>, transform_indices = @transform_3, window_bounds = array<i64: 1, 256>}, {pipeline_mode = #tpu.pipeline_mode<synchronous>, transform_indices = @transform_4, window_bounds = array<i64: 256, 256>}, {pipeline_mode = #tpu.pipeline_mode<synchronous>, transform_indices = @transform_5, window_bounds = array<i64: 1, 256>}, {pipeline_mode = #tpu.pipeline_mode<synchronous>, transform_indices = @transform_6, window_bounds = array<i64: 256, 128>}, {pipeline_mode = #tpu.pipeline_mode<synchronous>, transform_indices = @transform_7, window_bounds = array<i64: 1, 128>}, {pipeline_mode = #tpu.pipeline_mode<synchronous>, transform_indices = @transform_8, window_bounds = array<i64: 2, 256>}, {pipeline_mode = #tpu.pipeline_mode<synchronous>, transform_indices = @transform_9, window_bounds = array<i64: 1, 256>}, {pipeline_mode = #tpu.pipeline_mode<synchronous>, transform_indices = @transform_10, window_bounds = array<i64: 256, 256>}, {pipeline_mode = #tpu.pipeline_mode<synchronous>, transform_indices = @transform_11, window_bounds = array<i64: 1, 256>}, {pipeline_mode = #tpu.pipeline_mode<synchronous>, transform_indices = @transform_12, window_bounds = array<i64: 256, 784>}, {pipeline_mode = #tpu.pipeline_mode<synchronous>, transform_indices = @transform_13, window_bounds = array<i64: 1, 784>}, {transform_indices = @transform_14, window_bounds = array<i64: 8, 784>}, {transform_indices = @transform_15, window_bounds = array<i64: 8, 128>}]} {
    %c0 = arith.constant 0 : index
    %c0_0 = arith.constant 0 : index
    %0 = vector.load %arg1[%c0, %c0_0] : memref<8x784xf32, #tpu.memory_space<vmem>>, vector<8x784xf32>
    %1 = arith.truncf %0 : vector<8x784xf32> to vector<8x784xbf16>
    %c0_1 = arith.constant 0 : index
    %c0_2 = arith.constant 0 : index
    %2 = vector.load %arg3[%c0_1, %c0_2] : memref<784x256xbf16, #tpu.memory_space<vmem>>, vector<784x256xbf16>
    %cst = arith.constant dense<0.000000e+00> : vector<8x256xf32>
    %3 = tpu.matmul %1, %2, %cst {dimension_numbers = #tpu.dot_dimension_numbers<[1], [0], [0], [1], [0, 0, 1, 1], [], []>} : vector<8x784xbf16>, vector<784x256xbf16>, vector<8x256xf32> -> vector<8x256xf32>
    %c0_3 = arith.constant 0 : index
    %c0_4 = arith.constant 0 : index
    %4 = vector.load %arg4[%c0_3, %c0_4] : memref<1x256xf32, #tpu.memory_space<vmem>>, vector<1x256xf32>
    %5 = vector.broadcast %4 : vector<1x256xf32> to vector<8x256xf32>
    %6 = arith.addf %3, %5 : vector<8x256xf32>
    %cst_5 = arith.constant 0.000000e+00 : f32
    %7 = vector.broadcast %cst_5 : f32 to vector<8x256xf32>
    %8 = arith.maximumf %6, %7 : vector<8x256xf32>
    %9 = arith.truncf %8 : vector<8x256xf32> to vector<8x256xbf16>
    %c0_6 = arith.constant 0 : index
    %c0_7 = arith.constant 0 : index
    %10 = vector.load %arg5[%c0_6, %c0_7] : memref<256x256xbf16, #tpu.memory_space<vmem>>, vector<256x256xbf16>
    %cst_8 = arith.constant dense<0.000000e+00> : vector<8x256xf32>
    %11 = tpu.matmul %9, %10, %cst_8 {dimension_numbers = #tpu.dot_dimension_numbers<[1], [0], [0], [1], [0, 0, 1, 1], [], []>} : vector<8x256xbf16>, vector<256x256xbf16>, vector<8x256xf32> -> vector<8x256xf32>
    %c0_9 = arith.constant 0 : index
    %c0_10 = arith.constant 0 : index
    %12 = vector.load %arg6[%c0_9, %c0_10] : memref<1x256xf32, #tpu.memory_space<vmem>>, vector<1x256xf32>
    %13 = vector.broadcast %12 : vector<1x256xf32> to vector<8x256xf32>
    %14 = arith.addf %11, %13 : vector<8x256xf32>
    %cst_11 = arith.constant 0.000000e+00 : f32
    %15 = vector.broadcast %cst_11 : f32 to vector<8x256xf32>
    %16 = arith.maximumf %14, %15 : vector<8x256xf32>
    %17 = arith.truncf %16 : vector<8x256xf32> to vector<8x256xbf16>
    %c0_12 = arith.constant 0 : index
    %c0_13 = arith.constant 0 : index
    %18 = vector.load %arg7[%c0_12, %c0_13] : memref<256x128xbf16, #tpu.memory_space<vmem>>, vector<256x128xbf16>
    %cst_14 = arith.constant dense<0.000000e+00> : vector<8x128xf32>
    %19 = tpu.matmul %17, %18, %cst_14 {dimension_numbers = #tpu.dot_dimension_numbers<[1], [0], [0], [1], [0, 0, 1, 1], [], []>} : vector<8x256xbf16>, vector<256x128xbf16>, vector<8x128xf32> -> vector<8x128xf32>
    %c0_15 = arith.constant 0 : index
    %c0_16 = arith.constant 0 : index
    %20 = vector.load %arg8[%c0_15, %c0_16] : memref<1x128xf32, #tpu.memory_space<vmem>>, vector<1x128xf32>
    %21 = vector.broadcast %20 : vector<1x128xf32> to vector<8x128xf32>
    %22 = arith.addf %19, %21 : vector<8x128xf32>
    %c0_17 = arith.constant 0 : index
    %c0_18 = arith.constant 0 : index
    %23 = vector.load %arg16[%c0_17, %c0_18] : memref<8x128xf32, #tpu.memory_space<vmem>>, vector<8x128xf32>
    tpu.vector_store %arg16[%c0_17, %c0_18], %22 {strides = array<i32>} : memref<8x128xf32, #tpu.memory_space<vmem>>, vector<8x128xf32>,
    %24 = vector.extract_strided_slice %22 {offsets = [0, 0], sizes = [8, 2], strides = [1, 1]} : vector<8x128xf32> to vector<8x2xf32>
    %25 = vector.extract_strided_slice %22 {offsets = [0, 2], sizes = [8, 2], strides = [1, 1]} : vector<8x128xf32> to vector<8x2xf32>
    %c0_19 = arith.constant 0 : index
    %c0_20 = arith.constant 0 : index
    %26 = vector.load %arg2[%c0_19, %c0_20] : memref<8x2xf32, #tpu.memory_space<vmem>>, vector<8x2xf32>
    %cst_21 = arith.constant 5.000000e-01 : f32
    %27 = vector.broadcast %cst_21 : f32 to vector<8x2xf32>
    %28 = arith.mulf %27, %25 : vector<8x2xf32>
    %29 = math.exp %28 : vector<8x2xf32>
    %30 = arith.mulf %26, %29 : vector<8x2xf32>
    %31 = arith.addf %24, %30 : vector<8x2xf32>
    %c0_22 = arith.constant 0 : index
    %c0_23 = arith.constant 0 : index
    %32 = vector.load %arg9[%c0_22, %c0_23] : memref<2x256xf32, #tpu.memory_space<vmem>>, vector<2x256xf32>
    %33 = vector.extract_strided_slice %31 {offsets = [0, 0], sizes = [8, 1], strides = [1, 1]} : vector<8x2xf32> to vector<8x1xf32>
    %34 = vector.extract_strided_slice %32 {offsets = [0, 0], sizes = [1, 256], strides = [1, 1]} : vector<2x256xf32> to vector<1x256xf32>
    %35 = vector.broadcast %33 : vector<8x1xf32> to vector<8x256xf32>
    %36 = vector.broadcast %34 : vector<1x256xf32> to vector<8x256xf32>
    %37 = arith.mulf %35, %36 : vector<8x256xf32>
    %38 = vector.extract_strided_slice %31 {offsets = [0, 1], sizes = [8, 1], strides = [1, 1]} : vector<8x2xf32> to vector<8x1xf32>
    %39 = vector.extract_strided_slice %32 {offsets = [1, 0], sizes = [1, 256], strides = [1, 1]} : vector<2x256xf32> to vector<1x256xf32>
    %40 = vector.broadcast %38 : vector<8x1xf32> to vector<8x256xf32>
    %41 = vector.broadcast %39 : vector<1x256xf32> to vector<8x256xf32>
    %42 = arith.mulf %40, %41 : vector<8x256xf32>
    %43 = arith.addf %37, %42 : vector<8x256xf32>
    %c0_24 = arith.constant 0 : index
    %c0_25 = arith.constant 0 : index
    %44 = vector.load %arg10[%c0_24, %c0_25] : memref<1x256xf32, #tpu.memory_space<vmem>>, vector<1x256xf32>
    %45 = vector.broadcast %44 : vector<1x256xf32> to vector<8x256xf32>
    %46 = arith.addf %43, %45 : vector<8x256xf32>
    %cst_26 = arith.constant 0.000000e+00 : f32
    %47 = vector.broadcast %cst_26 : f32 to vector<8x256xf32>
    %48 = arith.maximumf %46, %47 : vector<8x256xf32>
    %49 = arith.truncf %48 : vector<8x256xf32> to vector<8x256xbf16>
    %c0_27 = arith.constant 0 : index
    %c0_28 = arith.constant 0 : index
    %50 = vector.load %arg11[%c0_27, %c0_28] : memref<256x256xbf16, #tpu.memory_space<vmem>>, vector<256x256xbf16>
    %cst_29 = arith.constant dense<0.000000e+00> : vector<8x256xf32>
    %51 = tpu.matmul %49, %50, %cst_29 {dimension_numbers = #tpu.dot_dimension_numbers<[1], [0], [0], [1], [0, 0, 1, 1], [], []>} : vector<8x256xbf16>, vector<256x256xbf16>, vector<8x256xf32> -> vector<8x256xf32>
    %c0_30 = arith.constant 0 : index
    %c0_31 = arith.constant 0 : index
    %52 = vector.load %arg12[%c0_30, %c0_31] : memref<1x256xf32, #tpu.memory_space<vmem>>, vector<1x256xf32>
    %53 = vector.broadcast %52 : vector<1x256xf32> to vector<8x256xf32>
    %54 = arith.addf %51, %53 : vector<8x256xf32>
    %cst_32 = arith.constant 0.000000e+00 : f32
    %55 = vector.broadcast %cst_32 : f32 to vector<8x256xf32>
    %56 = arith.maximumf %54, %55 : vector<8x256xf32>
    %57 = arith.truncf %56 : vector<8x256xf32> to vector<8x256xbf16>
    %c0_33 = arith.constant 0 : index
    %c0_34 = arith.constant 0 : index
    %58 = vector.load %arg13[%c0_33, %c0_34] : memref<256x784xbf16, #tpu.memory_space<vmem>>, vector<256x784xbf16>
    %cst_35 = arith.constant dense<0.000000e+00> : vector<8x784xf32>
    %59 = tpu.matmul %57, %58, %cst_35 {dimension_numbers = #tpu.dot_dimension_numbers<[1], [0], [0], [1], [0, 0, 1, 1], [], []>} : vector<8x256xbf16>, vector<256x784xbf16>, vector<8x784xf32> -> vector<8x784xf32>
    %c0_36 = arith.constant 0 : index
    %c0_37 = arith.constant 0 : index
    %60 = vector.load %arg14[%c0_36, %c0_37] : memref<1x784xf32, #tpu.memory_space<vmem>>, vector<1x784xf32>
    %61 = vector.broadcast %60 : vector<1x784xf32> to vector<8x784xf32>
    %62 = arith.addf %59, %61 : vector<8x784xf32>
    %cst_38 = arith.constant 0.000000e+00 : f32
    %63 = vector.broadcast %cst_38 : f32 to vector<8x784xf32>
    %64 = arith.subf %63, %62 : vector<8x784xf32>
    %65 = math.exp %64 : vector<8x784xf32>
    %cst_39 = arith.constant 1.000000e+00 : f32
    %66 = vector.broadcast %cst_39 : f32 to vector<8x784xf32>
    %67 = arith.addf %66, %65 : vector<8x784xf32>
    %68 = tpu.reciprocal %67 {approx = true} : vector<8x784xf32> -> vector<8x784xf32>
    %69 = arith.truncf %68 : vector<8x784xf32> to vector<8x784xbf16>
    %c0_40 = arith.constant 0 : index
    %c0_41 = arith.constant 0 : index
    %70 = vector.load %arg15[%c0_40, %c0_41] : memref<8x784xbf16, #tpu.memory_space<vmem>>, vector<8x784xbf16>
    tpu.vector_store %arg15[%c0_40, %c0_41], %69 {strides = array<i32>} : memref<8x784xbf16, #tpu.memory_space<vmem>>, vector<8x784xbf16>,
    return
  }
  func.func @transform_0(%arg0: i32) -> (i32, i32) {
    %c0_i32 = arith.constant 0 : i32
    %c0_i32_0 = arith.constant 0 : i32
    return %arg0, %c0_i32 : i32, i32
  }
  func.func @transform_1(%arg0: i32) -> (i32, i32) {
    %c0_i32 = arith.constant 0 : i32
    %c0_i32_0 = arith.constant 0 : i32
    return %arg0, %c0_i32 : i32, i32
  }
  func.func @transform_2(%arg0: i32) -> (i32, i32) {
    %c0_i32 = arith.constant 0 : i32
    %c0_i32_0 = arith.constant 0 : i32
    %c0_i32_1 = arith.constant 0 : i32
    return %c0_i32, %c0_i32_0 : i32, i32
  }
  func.func @transform_3(%arg0: i32) -> (i32, i32) {
    %c0_i32 = arith.constant 0 : i32
    %c0_i32_0 = arith.constant 0 : i32
    %c0_i32_1 = arith.constant 0 : i32
    return %c0_i32, %c0_i32_0 : i32, i32
  }
  func.func @transform_4(%arg0: i32) -> (i32, i32) {
    %c0_i32 = arith.constant 0 : i32
    %c0_i32_0 = arith.constant 0 : i32
    %c0_i32_1 = arith.constant 0 : i32
    return %c0_i32, %c0_i32_0 : i32, i32
  }
  func.func @transform_5(%arg0: i32) -> (i32, i32) {
    %c0_i32 = arith.constant 0 : i32
    %c0_i32_0 = arith.constant 0 : i32
    %c0_i32_1 = arith.constant 0 : i32
    return %c0_i32, %c0_i32_0 : i32, i32
  }
  func.func @transform_6(%arg0: i32) -> (i32, i32) {
    %c0_i32 = arith.constant 0 : i32
    %c0_i32_0 = arith.constant 0 : i32
    %c0_i32_1 = arith.constant 0 : i32
    return %c0_i32, %c0_i32_0 : i32, i32
  }
  func.func @transform_7(%arg0: i32) -> (i32, i32) {
    %c0_i32 = arith.constant 0 : i32
    %c0_i32_0 = arith.constant 0 : i32
    %c0_i32_1 = arith.constant 0 : i32
    return %c0_i32, %c0_i32_0 : i32, i32
  }
  func.func @transform_8(%arg0: i32) -> (i32, i32) {
    %c0_i32 = arith.constant 0 : i32
    %c0_i32_0 = arith.constant 0 : i32
    %c0_i32_1 = arith.constant 0 : i32
    return %c0_i32, %c0_i32_0 : i32, i32
  }
  func.func @transform_9(%arg0: i32) -> (i32, i32) {
    %c0_i32 = arith.constant 0 : i32
    %c0_i32_0 = arith.constant 0 : i32
    %c0_i32_1 = arith.constant 0 : i32
    return %c0_i32, %c0_i32_0 : i32, i32
  }
  func.func @transform_10(%arg0: i32) -> (i32, i32) {
    %c0_i32 = arith.constant 0 : i32
    %c0_i32_0 = arith.constant 0 : i32
    %c0_i32_1 = arith.constant 0 : i32
    return %c0_i32, %c0_i32_0 : i32, i32
  }
  func.func @transform_11(%arg0: i32) -> (i32, i32) {
    %c0_i32 = arith.constant 0 : i32
    %c0_i32_0 = arith.constant 0 : i32
    %c0_i32_1 = arith.constant 0 : i32
    return %c0_i32, %c0_i32_0 : i32, i32
  }
  func.func @transform_12(%arg0: i32) -> (i32, i32) {
    %c0_i32 = arith.constant 0 : i32
    %c0_i32_0 = arith.constant 0 : i32
    %c0_i32_1 = arith.constant 0 : i32
    return %c0_i32, %c0_i32_0 : i32, i32
  }
  func.func @transform_13(%arg0: i32) -> (i32, i32) {
    %c0_i32 = arith.constant 0 : i32
    %c0_i32_0 = arith.constant 0 : i32
    %c0_i32_1 = arith.constant 0 : i32
    return %c0_i32, %c0_i32_0 : i32, i32
  }
  func.func @transform_14(%arg0: i32) -> (i32, i32) {
    %c0_i32 = arith.constant 0 : i32
    %c0_i32_0 = arith.constant 0 : i32
    return %arg0, %c0_i32 : i32, i32
  }
  func.func @transform_15(%arg0: i32) -> (i32, i32) {
    %c0_i32 = arith.constant 0 : i32
    %c0_i32_0 = arith.constant 0 : i32
    return %arg0, %c0_i32 : i32, i32
  }
}

</mosaic_0001>

<bundles_post_ra>
// kernel: vae_forward.1
= control target key start
LH: loop header
LB: loop body
LE: loop exit
PB: predicated region body
PF: predicated region fallthrough
CT: control target
= control target key end

     0   :  { %v3405_v2 = vmov 0   ;;  %vm665_vm0 = vcmask 130048   ;;  %s4471_s0 = inlined_call_operand.vmem [shape: f32[8,784], index: 0, kind: input, shape index: {}]   ;;  %s4472_s1 = inlined_call_operand.vmem [shape: f32[8,2], index: 1, kind: input, shape index: {}]   ;;  %s4473_s2 = inlined_call_operand.vmem [shape: bf16[784,256], index: 2, kind: input, shape index: {}]   ;;  %s4474_s3 = inlined_call_operand.vmem [shape: f32[1,256], index: 3, kind: input, shape index: {}]   ;;  %s4475_s4 = inlined_call_operand.vmem [shape: bf16[256,256], index: 4, kind: input, shape index: {}]   ;;  %s4476_s5 = inlined_call_operand.vmem [shape: f32[1,256], index: 5, kind: input, shape index: {}]   ;;  %s4477_s6 = inlined_call_operand.vmem [shape: bf16[256,128], index: 6, kind: input, shape index: {}]   ;;  %s4478_s7 = inlined_call_operand.vmem [shape: f32[1,128], index: 7, kind: input, shape index: {}]   ;;  %s4479_s8 = inlined_call_operand.vmem [shape: f32[2,256], index: 8, kind: input, shape index: {}]   ;;  %s4480_s9 = inlined_call_operand.vmem [shape: f32[1,256], index: 9, kind: input, shape index: {}]   ;;  %s4481_s10 = inlined_call_operand.vmem [shape: bf16[256,256], index: 10, kind: input, shape index: {}]   ;;  %s4482_s11 = inlined_call_operand.vmem [shape: f32[1,256], index: 11, kind: input, shape index: {}]   ;;  %s4483_s12 = inlined_call_operand.vmem [shape: bf16[256,784], index: 12, kind: input, shape index: {}]   ;;  %s4484_s13 = inlined_call_operand.vmem [shape: f32[1,784], index: 13, kind: input, shape index: {}]   ;;  %s4485_s14 = inlined_call_operand.hbm [shape: bf16[8,784], index: 14, kind: output, shape index: {0}]   ;;  %s4486_s15 = inlined_call_operand.vmem [shape: f32[8,128], index: 15, kind: output, shape index: {1}]  }
   0x1   :  { %v2934_v0 = vld [vmem:[%s4473_s2 + $0x74] ss:$8 sps:$4 sm:$0xff]   ;;  %v2936_v1 = vld [vmem:[%s4473_s2 + $0x70] ss:$8 sps:$4 sm:$0xff]   ;;  %2931 = vset.pattern.permute.xlu0 %v3405_v2  ;;  %v2940_v5 = vld [vmem:[%s4473_s2 + $0x64] ss:$8 sps:$4 sm:$0xff]  }
   0x2   :  { %669 = vmatprep.subr.bf16.mxu0 %v2934_v0  ;;  %v2937_v3 = vld [vmem:[%s4473_s2 + $0x174] ss:$8 sps:$4 sm:$0xff]   ;;  %v2939_v4 = vld [vmem:[%s4473_s2 + $0x170] ss:$8 sps:$4 sm:$0xff]   ;;  %v2942_v6 = vld [vmem:[%s4473_s2 + $0x60] ss:$8 sps:$4 sm:$0xff]  }
   0x3   :  { %670 = vmatpush1.bf16.msra.mxu0 %v2936_v1  ;;  %710 = vmatprep.subr.bf16.mxu1 %v2937_v3  ;;  %v2943_v7 = vld [vmem:[%s4473_s2 + $0x164] ss:$8 sps:$4 sm:$0xff]   ;;  %v2945_v8 = vld [vmem:[%s4473_s2 + $0x160] ss:$8 sps:$4 sm:$0xff]   ;;  %v2946_v9 = vld [vmem:[%s4473_s2 + $0x54] ss:$8 sps:$4 sm:$0xff]  }
   0x4   :  { %711 = vmatpush1.bf16.msra.mxu1 %v2939_v4  ;;  %671 = vmatprep.subr.bf16.mxu0 %v2940_v5  ;;  %v2948_v10 = vld [vmem:[%s4473_s2 + $0x50] ss:$8 sps:$4 sm:$0xff]   ;;  %v2949_v11 = vld [vmem:[%s4473_s2 + $0x154] ss:$8 sps:$4 sm:$0xff]   ;;  %v2952_v12 = vld [vmem:[%s4473_s2 + $0x44] ss:$8 sps:$4 sm:$0xff]  }
   0x5   :  { %712 = vmatprep.subr.bf16.mxu1 %v2943_v7  ;;  %v2951_v13 = vld [vmem:[%s4473_s2 + $0x150] ss:$8 sps:$4 sm:$0xff]   ;;  %v2955_v14 = vld [vmem:[%s4473_s2 + $0x144] ss:$8 sps:$4 sm:$0xff]   ;;  %v2954_v15 = vld [vmem:[%s4473_s2 + $0x40] ss:$8 sps:$4 sm:$0xff]  }
   0x6   :  { %v2958_v16 = vld [vmem:[%s4473_s2 + $0x34] ss:$8 sps:$4 sm:$0xff]   ;;  %v2957_v17 = vld [vmem:[%s4473_s2 + $0x140] ss:$8 sps:$4 sm:$0xff]   ;;  %v2960_v19 = vld [vmem:[%s4473_s2 + $0x30] ss:$8 sps:$4 sm:$0xff]  }
   0x7   :  { %672 = vmatpush1.bf16.msra.mxu0 %v2942_v6  ;;  %v2961_v18 = vld [vmem:[%s4473_s2 + $0x134] ss:$8 sps:$4 sm:$0xff]   ;;  %v2964_v20 = vld [vmem:[%s4473_s2 + $0x24] ss:$8 sps:$4 sm:$0xff]   ;;  %v2963_v21 = vld [vmem:[%s4473_s2 + $0x130] ss:$8 sps:$4 sm:$0xff]  }
   0x8   :  { %673 = vmatprep.subr.bf16.mxu0 %v2946_v9  ;;  %713 = vmatpush1.bf16.msra.mxu1 %v2945_v8  ;;  %v2967_v22 = vld [vmem:[%s4473_s2 + $0x124] ss:$8 sps:$4 sm:$0xff]   ;;  %v2966_v23 = vld [vmem:[%s4473_s2 + $0x20] ss:$8 sps:$4 sm:$0xff]   ;;  %v2970_v24 = vld [vmem:[%s4473_s2 + $0x14] ss:$8 sps:$4 sm:$0xff]  }
   0x9   :  { %714 = vmatprep.subr.bf16.mxu1 %v2949_v11  ;;  %v2969_v25 = vld [vmem:[%s4473_s2 + $0x120] ss:$8 sps:$4 sm:$0xff]   ;;  %v2973_v26 = vld [vmem:[%s4473_s2 + $0x114] ss:$8 sps:$4 sm:$0xff]   ;;  %v2972_v27 = vld [vmem:[%s4473_s2 + $0x10] ss:$8 sps:$4 sm:$0xff]  }
   0xa   :  { %v2976_v28 = vld [vmem:[%s4473_s2 + $0x4] ss:$8 sps:$4 sm:$0xff]   ;;  %v2975_v29 = vld [vmem:[%s4473_s2 + $0x110] ss:$8 sps:$4 sm:$0xff]   ;;  %v2978_v31 = vld [vmem:[%s4473_s2] ss:$8 sps:$4 sm:$0xff]  }
   0xb   :  { %674 = vmatpush1.bf16.msra.mxu0 %v2948_v10  ;;  %v2979_v30 = vld [vmem:[%s4473_s2 + $0x104] ss:$8 sps:$4 sm:$0xff]   ;;  %v2982_v32 = vld [vmem:[%s4473_s2 + $0xf4] ss:$8 sps:$4 sm:$0xff]   ;;  %v2981_v33 = vld [vmem:[%s4473_s2 + $0x100] ss:$8 sps:$4 sm:$0xff]  }
   0xc   :  { %675 = vmatprep.subr.bf16.mxu0 %v2952_v12  ;;  %715 = vmatpush1.bf16.msra.mxu1 %v2951_v13  ;;  %v2985_v34 = vld [vmem:[%s4473_s2 + $0x1f4] ss:$8 sps:$4 sm:$0xff]   ;;  %v2984_v35 = vld [vmem:[%s4473_s2 + $0xf0] ss:$8 sps:$4 sm:$0xff]   ;;  %v2988_v36 = vld [vmem:[%s4473_s2 + $0xe4] ss:$8 sps:$4 sm:$0xff]  }
   0xd   :  { %716 = vmatprep.subr.bf16.mxu1 %v2955_v14  ;;  %v2987_v37 = vld [vmem:[%s4473_s2 + $0x1f0] ss:$8 sps:$4 sm:$0xff]   ;;  %v2991_v38 = vld [vmem:[%s4473_s2 + $0x1e4] ss:$8 sps:$4 sm:$0xff]   ;;  %v2990_v39 = vld [vmem:[%s4473_s2 + $0xe0] ss:$8 sps:$4 sm:$0xff]  }
   0xe   :  { %v2994_v40 = vld [vmem:[%s4473_s2 + $0xd4] ss:$8 sps:$4 sm:$0xff]   ;;  %v2993_v41 = vld [vmem:[%s4473_s2 + $0x1e0] ss:$8 sps:$4 sm:$0xff]   ;;  %v2996_v43 = vld [vmem:[%s4473_s2 + $0xd0] ss:$8 sps:$4 sm:$0xff]  }
   0xf   :  { %676 = vmatpush1.bf16.msra.mxu0 %v2954_v15  ;;  %v2997_v42 = vld [vmem:[%s4473_s2 + $0x1d4] ss:$8 sps:$4 sm:$0xff]   ;;  %v3000_v44 = vld [vmem:[%s4473_s2 + $0xc4] ss:$8 sps:$4 sm:$0xff]   ;;  %v2999_v45 = vld [vmem:[%s4473_s2 + $0x1d0] ss:$8 sps:$4 sm:$0xff]  }
  0x10   :  { %677 = vmatprep.subr.bf16.mxu0 %v2958_v16  ;;  %717 = vmatpush1.bf16.msra.mxu1 %v2957_v17  ;;  %v3003_v46 = vld [vmem:[%s4473_s2 + $0x1c4] ss:$8 sps:$4 sm:$0xff]   ;;  %v3002_v48 = vld [vmem:[%s4473_s2 + $0xc0] ss:$8 sps:$4 sm:$0xff]   ;;  %v3006_v50 = vld [vmem:[%s4473_s2 + $0xb4] ss:$8 sps:$4 sm:$0xff]  }
  0x11   :  { %718 = vmatprep.subr.bf16.mxu1 %v2961_v18  ;;  %v52_v47 = vld [vmem:[%s4471_s0 + $0x8] sm:$0xff]  ;;  %v54_v51 = vld [vmem:[%s4471_s0 + $0x18] sm:$0xff]  ;;  %v51_v6 = vld [vmem:[%s4471_s0] sm:$0xff] }
  0x12   :  { %v59_v49 = vpack.c.bf16 %v52_v47, %v52_v47  ;;  %v3005_v52 = vld [vmem:[%s4473_s2 + $0x1c0] ss:$8 sps:$4 sm:$0xff]   ;;  %v61_v53 = vpack.c.bf16 %v54_v51, %v54_v51  ;;  %v3009_v54 = vld [vmem:[%s4473_s2 + $0x1b4] ss:$8 sps:$4 sm:$0xff]   ;;  %v3008_v55 = vld [vmem:[%s4473_s2 + $0xb0] ss:$8 sps:$4 sm:$0xff]   ;;  %v58_v9 = vpack.c.bf16 %v51_v6, %v51_v6 }
  0x13   :  { %678 = vmatpush1.bf16.msra.mxu0 %v2960_v19  ;;  %v3012_v56 = vld [vmem:[%s4473_s2 + $0xa4] ss:$8 sps:$4 sm:$0xff]   ;;  %v3011_v57 = vld [vmem:[%s4473_s2 + $0x1b0] ss:$8 sps:$4 sm:$0xff]   ;;  %v3014_v59 = vld [vmem:[%s4473_s2 + $0xa0] ss:$8 sps:$4 sm:$0xff]  }
  0x14   :  { %679 = vmatprep.subr.bf16.mxu0 %v2964_v20  ;;  %719 = vmatpush1.bf16.msra.mxu1 %v2963_v21  ;;  %v3015_v58 = vld [vmem:[%s4473_s2 + $0x1a4] ss:$8 sps:$4 sm:$0xff]   ;;  %v3018_v60 = vld [vmem:[%s4473_s2 + $0x94] ss:$8 sps:$4 sm:$0xff]   ;;  %v3017_v61 = vld [vmem:[%s4473_s2 + $0x1a0] ss:$8 sps:$4 sm:$0xff]  }
  0x15   :  { %720 = vmatprep.subr.bf16.mxu1 %v2967_v22  ;;  %701 = vmatprep.mubr.bf16.mxu0 %v59_v49  ;;  %v3021_v62 = vld [vmem:[%s4473_s2 + $0x194] ss:$8 sps:$4 sm:$0xff]   ;;  %v3020_v63 = vld [vmem:[%s4473_s2 + $0x90] ss:$8 sps:$4 sm:$0xff]   ;;  %v3024_v0 = vld [vmem:[%s4473_s2 + $0x84] ss:$8 sps:$4 sm:$0xff]  }
  0x16   :  { %742 = vmatprep.mubr.bf16.mxu1 %v61_v53  ;;  %v3023_v1 = vld [vmem:[%s4473_s2 + $0x190] ss:$8 sps:$4 sm:$0xff]   ;;  %v3026_v3 = vld [vmem:[%s4473_s2 + $0x80] ss:$8 sps:$4 sm:$0xff]   ;;  %v3027_v4 = vld [vmem:[%s4473_s2 + $0x184] ss:$8 sps:$4 sm:$0xff]  }
  0x17   :  { %680 = vmatpush1.bf16.msra.mxu0 %v2966_v23  ;;  %v3029_v5 = vld [vmem:[%s4473_s2 + $0x180] ss:$8 sps:$4 sm:$0xff]   ;;  %v3032_v7 = vld [vmem:[%s4473_s2 + $0x274] ss:$8 sps:$4 sm:$0xff]   ;;  %v3030_v10 = vld [vmem:[%s4473_s2 + $0x270] ss:$8 sps:$4 sm:$0xff]  }
  0x18   :  { %681 = vmatprep.subr.bf16.mxu0 %v2970_v24  ;;  %721 = vmatpush1.bf16.msra.mxu1 %v2969_v25  ;;  %v53_v8 = vld [vmem:[%s4471_s0 + $0x10] sm:$0xff]  ;;  %v3035_v11 = vld [vmem:[%s4473_s2 + $0x264] ss:$8 sps:$4 sm:$0xff]   ;;  %v3075_v13 = vld [vmem:[%s4473_s2 + $0x300] ss:$8 sps:$4 sm:$0xff]  }
  0x19   :  { %722 = vmatprep.subr.bf16.mxu1 %v2973_v26  ;;  %v60_v12 = vpack.c.bf16 %v53_v8, %v53_v8  ;;  %v3077_v14 = vld [vmem:[%s4473_s2 + $0x304] ss:$8 sps:$4 sm:$0xff]   ;;  %v3033_v15 = vld [vmem:[%s4473_s2 + $0x260] ss:$8 sps:$4 sm:$0xff]   ;;  %v3038_v16 = vld [vmem:[%s4473_s2 + $0x254] ss:$8 sps:$4 sm:$0xff]  }
  0x1a   :  { %v57_v17 = vld [vmem:[%s4471_s0 + $0x30] sm:$0xff]  ;;  %v56_v18 = vld [vmem:[%s4471_s0 + $0x28] sm:$0xff]  ;;  %v55_v47 = vld [vmem:[%s4471_s0 + $0x20] sm:$0xff] }
  0x1b   :  { %682 = vmatpush1.bf16.msra.mxu0 %v2972_v27  ;;  %v63_v19 = vpack.c.bf16 %v56_v18, %v56_v18  ;;  %v3036_v20 = vld [vmem:[%s4473_s2 + $0x250] ss:$8 sps:$4 sm:$0xff]   ;;  %v3041_v21 = vld [vmem:[%s4473_s2 + $0x244] ss:$8 sps:$4 sm:$0xff]   ;;  %v64_v22 = vpack.c.bf16 %v57_v17, %v57_v17  ;;  %v3039_v23 = vld [vmem:[%s4473_s2 + $0x240] ss:$8 sps:$4 sm:$0xff]  }
  0x1c   :  { %683 = vmatprep.subr.bf16.mxu0 %v2976_v28  ;;  %723 = vmatpush1.bf16.msra.mxu1 %v2975_v29  ;;  %v3044_v24 = vld [vmem:[%s4473_s2 + $0x234] ss:$8 sps:$4 sm:$0xff]   ;;  %v3047_v25 = vld [vmem:[%s4473_s2 + $0x224] ss:$8 sps:$4 sm:$0xff]   ;;  %v3045_v26 = vld [vmem:[%s4473_s2 + $0x220] ss:$8 sps:$4 sm:$0xff]  }
  0x1d   :  { %724 = vmatprep.subr.bf16.mxu1 %v2979_v30  ;;  %v3050_v27 = vld [vmem:[%s4473_s2 + $0x214] ss:$8 sps:$4 sm:$0xff]   ;;  %v3048_v28 = vld [vmem:[%s4473_s2 + $0x210] ss:$8 sps:$4 sm:$0xff]   ;;  %v3053_v29 = vld [vmem:[%s4473_s2 + $0x204] ss:$8 sps:$4 sm:$0xff]  }
  0x1e   :  { %v3051_v30 = vld [vmem:[%s4473_s2 + $0x200] ss:$8 sps:$4 sm:$0xff]   ;;  %v3081_v49 = vld [vmem:[%s4475_s4 + $0x70] ss:$8 sps:$4 sm:$0xff]   ;;  %v3086_v51 = vld [vmem:[%s4475_s4 + $0x64] ss:$8 sps:$4 sm:$0xff]  }
  0x1f   :  { %684 = vmatpush1.bf16.msra.mxu0 %v2978_v31  ;;  %v3056_v31 = vld [vmem:[%s4473_s2 + $0x2f4] ss:$8 sps:$4 sm:$0xff]  }
  0x20   :  { %685 = vmatprep.subr.bf16.mxu0 %v2982_v32  ;;  %725 = vmatpush1.bf16.msra.mxu1 %v2981_v33  ;;  %v3054_v32 = vld [vmem:[%s4473_s2 + $0x2f0] ss:$8 sps:$4 sm:$0xff]   ;;  %v3059_v33 = vld [vmem:[%s4473_s2 + $0x2e4] ss:$8 sps:$4 sm:$0xff]   ;;  %v3089_v53 = vld [vmem:[%s4475_s4 + $0x54] ss:$8 sps:$4 sm:$0xff]  }
  0x21   :  { %726 = vmatprep.subr.bf16.mxu1 %v2985_v34  ;;  %v3057_v34 = vld [vmem:[%s4473_s2 + $0x2e0] ss:$8 sps:$4 sm:$0xff]  }
  0x23   :  { %686 = vmatpush2.bf16.msra.mxu0 %v2984_v35  ;;  %v3062_v35 = vld [vmem:[%s4473_s2 + $0x2d4] ss:$8 sps:$4 sm:$0xff]  }
  0x24   :  { %687 = vmatprep.subr.bf16.mxu0 %v2988_v36  ;;  %727 = vmatpush2.bf16.msra.mxu1 %v2987_v37  ;;  %v3060_v36 = vld [vmem:[%s4473_s2 + $0x2d0] ss:$8 sps:$4 sm:$0xff]   ;;  %v3065_v37 = vld [vmem:[%s4473_s2 + $0x2c4] ss:$8 sps:$4 sm:$0xff]  }
  0x25   :  { %728 = vmatprep.subr.bf16.mxu1 %v2991_v38  ;;  %v3063_v38 = vld [vmem:[%s4473_s2 + $0x2c0] ss:$8 sps:$4 sm:$0xff]  }
  0x27   :  { %688 = vmatpush2.bf16.msra.mxu0 %v2990_v39  ;;  %v3068_v39 = vld [vmem:[%s4473_s2 + $0x2b4] ss:$8 sps:$4 sm:$0xff]  }
  0x28   :  { %689 = vmatprep.subr.bf16.mxu0 %v2994_v40  ;;  %729 = vmatpush2.bf16.msra.mxu1 %v2993_v41  ;;  %v3066_v40 = vld [vmem:[%s4473_s2 + $0x2b0] ss:$8 sps:$4 sm:$0xff]   ;;  %v3071_v41 = vld [vmem:[%s4473_s2 + $0x2a4] ss:$8 sps:$4 sm:$0xff]  }
  0x29   :  { %730 = vmatprep.subr.bf16.mxu1 %v2997_v42  ;;  %v3069_v42 = vld [vmem:[%s4473_s2 + $0x2a0] ss:$8 sps:$4 sm:$0xff]  }
  0x2b   :  { %690 = vmatpush2.bf16.msra.mxu0 %v2996_v43  ;;  %v3074_v43 = vld [vmem:[%s4473_s2 + $0x294] ss:$8 sps:$4 sm:$0xff]  }
  0x2c   :  { %691 = vmatprep.subr.bf16.mxu0 %v3000_v44  ;;  %731 = vmatpush2.bf16.msra.mxu1 %v2999_v45  ;;  %v3072_v44 = vld [vmem:[%s4473_s2 + $0x290] ss:$8 sps:$4 sm:$0xff]   ;;  %v3080_v45 = vld [vmem:[%s4473_s2 + $0x284] ss:$8 sps:$4 sm:$0xff]  }
  0x2d   :  { %732 = vmatprep.subr.bf16.mxu1 %v3003_v46  ;;  %v3078_v46 = vld [vmem:[%s4473_s2 + $0x280] ss:$8 sps:$4 sm:$0xff]  }
  0x2f   :  { %692 = vmatpush2.bf16.msra.mxu0 %v3002_v48  ;;  %v62_v48 = vpack.c.bf16 %v55_v47, %v55_v47 }
  0x30   :  { %693 = vmatprep.subr.bf16.mxu0 %v3006_v50  ;;  %733 = vmatpush2.bf16.msra.mxu1 %v3005_v52  ;;  %v3083_v50 = vld [vmem:[%s4475_s4 + $0x74] ss:$8 sps:$4 sm:$0xff]   ;;  %v3084_v52 = vld [vmem:[%s4475_s4 + $0x60] ss:$8 sps:$4 sm:$0xff]  }
  0x31   :  { %734 = vmatprep.subr.bf16.mxu1 %v3009_v54  ;;  %v3087_v54 = vld [vmem:[%s4475_s4 + $0x50] ss:$8 sps:$4 sm:$0xff]  }
  0x33   :  { %694 = vmatpush2.bf16.msra.mxu0 %v3008_v55  ;;  %v3092_v55 = vld [vmem:[%s4475_s4 + $0x44] ss:$8 sps:$4 sm:$0xff]  }
  0x34   :  { %695 = vmatprep.subr.bf16.mxu0 %v3012_v56  ;;  %735 = vmatpush2.bf16.msra.mxu1 %v3011_v57  ;;  %v3090_v56 = vld [vmem:[%s4475_s4 + $0x40] ss:$8 sps:$4 sm:$0xff]   ;;  %v3095_v57 = vld [vmem:[%s4475_s4 + $0x34] ss:$8 sps:$4 sm:$0xff]  }
  0x35   :  { %736 = vmatprep.subr.bf16.mxu1 %v3015_v58  ;;  %v3093_v58 = vld [vmem:[%s4475_s4 + $0x30] ss:$8 sps:$4 sm:$0xff]  }
  0x37   :  { %696 = vmatpush2.bf16.msra.mxu0 %v3014_v59 }
  0x38   :  { %697 = vmatprep.subr.bf16.mxu0 %v3018_v60  ;;  %737 = vmatpush2.bf16.msra.mxu1 %v3017_v61 }
  0x39   :  { %738 = vmatprep.subr.bf16.mxu1 %v3021_v62 }
  0x3b   :  { %698 = vmatpush2.bf16.msra.mxu0 %v3020_v63 }
  0x3c   :  { %699 = vmatprep.subr.bf16.mxu0 %v3024_v0  ;;  %739 = vmatpush2.bf16.msra.mxu1 %v3023_v1 }
  0x3d   :  { %740 = vmatprep.subr.bf16.mxu1 %v3027_v4 }
  0x3f   :  { %700 = vmatpush2.bf16.msra.mxu0 %v3026_v3 }
  0x40   :  { %751 = vmatprep.subr.bf16.mxu0 %v3032_v7  ;;  %741 = vmatpush2.bf16.msra.mxu1 %v3029_v5 }
  0x41   :  { %806 = vmatprep.subr.bf16.mxu1 %v3077_v14 }
  0x42   :  { %702 = vmatmul.mubr.bf16.vlgmr.msra.gmra.mxu0 %v58_v9 }
  0x43   :  { %752 = vmatpush1.bf16.msra.mxu0 %v3030_v10  ;;  %743 = vmatmul.mubr.bf16.vlgmr.msra.gmra.mxu1 %v60_v12 }
  0x44   :  { %753 = vmatprep.subr.bf16.mxu0 %v3035_v11  ;;  %807 = vmatpush1.bf16.msra.mxu1 %v3075_v13 }
  0x45   :  { %824 = vmatprep.mubr.bf16.mxu1 %v3405_v2  ;;  %783 = vmatprep.mubr.bf16.mxu0 %v63_v19  ;;  %v3042_v2 = vld [vmem:[%s4473_s2 + $0x230] ss:$8 sps:$4 sm:$0xff]  }
  0x46   :  { %1041 = vmatprep.subr.bf16.mxu1 %v3083_v50 }
  0x47   :  { %754 = vmatpush1.bf16.msra.mxu0 %v3033_v15 }
  0x48   :  { %755 = vmatprep.subr.bf16.mxu0 %v3038_v16 }
  0x4b   :  { %756 = vmatpush1.bf16.msra.mxu0 %v3036_v20  ;;  %2681 = vmatmul.mubr.msk.bf16.vlgmr.msra.gmra.mxu1 %vm665_vm0, %v64_v22 }
  0x4c   :  { %757 = vmatprep.subr.bf16.mxu0 %v3041_v21  ;;  %1042 = vmatpush1.bf16.msra.mxu1 %v3081_v49 }
  0x4d   :  { %1043 = vmatprep.subr.bf16.mxu1 %v3086_v51 }
  0x4f   :  { %758 = vmatpush1.bf16.msra.mxu0 %v3039_v23 }
  0x50   :  { %759 = vmatprep.subr.bf16.mxu0 %v3044_v24  ;;  %1044 = vmatpush1.bf16.msra.mxu1 %v3084_v52 }
  0x51   :  { %1045 = vmatprep.subr.bf16.mxu1 %v3089_v53 }
  0x53   :  { %760 = vmatpush1.bf16.msra.mxu0 %v3042_v2 }
  0x54   :  { %761 = vmatprep.subr.bf16.mxu0 %v3047_v25  ;;  %1046 = vmatpush1.bf16.msra.mxu1 %v3087_v54 }
  0x55   :  { %1047 = vmatprep.subr.bf16.mxu1 %v3092_v55 }
  0x57   :  { %762 = vmatpush1.bf16.msra.mxu0 %v3045_v26 }
  0x58   :  { %763 = vmatprep.subr.bf16.mxu0 %v3050_v27  ;;  %1048 = vmatpush1.bf16.msra.mxu1 %v3090_v56 }
  0x5b   :  { %764 = vmatpush1.bf16.msra.mxu0 %v3048_v28 }
  0x5c   :  { %765 = vmatprep.subr.bf16.mxu0 %v3053_v29 }
  0x5f   :  { %766 = vmatpush1.bf16.msra.mxu0 %v3051_v30 }
  0x60   :  { %767 = vmatprep.subr.bf16.mxu0 %v3056_v31 }
  0x63   :  { %768 = vmatpush2.bf16.msra.mxu0 %v3054_v32 }
  0x64   :  { %769 = vmatprep.subr.bf16.mxu0 %v3059_v33 }
  0x67   :  { %770 = vmatpush2.bf16.msra.mxu0 %v3057_v34 }
  0x68   :  { %771 = vmatprep.subr.bf16.mxu0 %v3062_v35 }
  0x6b   :  { %772 = vmatpush2.bf16.msra.mxu0 %v3060_v36 }
  0x6c   :  { %773 = vmatprep.subr.bf16.mxu0 %v3065_v37 }
  0x6f   :  { %774 = vmatpush2.bf16.msra.mxu0 %v3063_v38 }
  0x70   :  { %775 = vmatprep.subr.bf16.mxu0 %v3068_v39 }
  0x73   :  { %776 = vmatpush2.bf16.msra.mxu0 %v3066_v40 }
  0x74   :  { %777 = vmatprep.subr.bf16.mxu0 %v3071_v41 }
  0x77   :  { %778 = vmatpush2.bf16.msra.mxu0 %v3069_v42 }
  0x78   :  { %779 = vmatprep.subr.bf16.mxu0 %v3074_v43 }
  0x7b   :  { %780 = vmatpush2.bf16.msra.mxu0 %v3072_v44 }
  0x7c   :  { %781 = vmatprep.subr.bf16.mxu0 %v3080_v45 }
  0x7f   :  { %782 = vmatpush2.bf16.msra.mxu0 %v3078_v46 }
  0x82   :  { %784 = vmatmul.mubr.bf16.vlgmr.msra.gmra.mxu0 %v62_v48 }
  0x83   :  { %21 = vsyncpa [#allocation3], 0  ;;  %1049 = vmatprep.subr.bf16.mxu1 %v3095_v57  ;;  %v3098_v59 = vld [vmem:[%s4475_s4 + $0x24] ss:$8 sps:$4 sm:$0xff]   ;;  %v3096_v60 = vld [vmem:[%s4475_s4 + $0x20] ss:$8 sps:$4 sm:$0xff]   ;;  %v165_v41 = vlaneseq }
  0x84   :  { %1050 = vmatpush1.bf16.msra.mxu1 %v3093_v58  ;;  %v3101_v61 = vld [vmem:[%s4475_s4 + $0x14] ss:$8 sps:$4 sm:$0xff]   ;;  %v3099_v62 = vld [vmem:[%s4475_s4 + $0x10] ss:$8 sps:$4 sm:$0xff]   ;;  %v3104_v63 = vld [vmem:[%s4475_s4 + $0x4] ss:$8 sps:$4 sm:$0xff]  }
  0x85   :  { %1051 = vmatprep.subr.bf16.mxu1 %v3098_v59  ;;  %v3102_v0 = vld [vmem:[%s4475_s4] ss:$8 sps:$4 sm:$0xff]   ;;  %v3107_v1 = vld [vmem:[%s4475_s4 + $0xf4] ss:$8 sps:$4 sm:$0xff]   ;;  %v3105_v3 = vld [vmem:[%s4475_s4 + $0xf0] ss:$8 sps:$4 sm:$0xff]  }
  0x86   :  { %v3110_v4 = vld [vmem:[%s4475_s4 + $0xe4] ss:$8 sps:$4 sm:$0xff]   ;;  %v3108_v5 = vld [vmem:[%s4475_s4 + $0xe0] ss:$8 sps:$4 sm:$0xff]   ;;  %v3113_v6 = vld [vmem:[%s4475_s4 + $0xd4] ss:$8 sps:$4 sm:$0xff]  }
  0x87   :  { %v3111_v7 = vld [vmem:[%s4475_s4 + $0xd0] ss:$8 sps:$4 sm:$0xff]   ;;  %v3116_v8 = vld [vmem:[%s4475_s4 + $0xc4] ss:$8 sps:$4 sm:$0xff]   ;;  %v3114_v9 = vld [vmem:[%s4475_s4 + $0xc0] ss:$8 sps:$4 sm:$0xff]  }
  0x88   :  { %1052 = vmatpush1.bf16.msra.mxu1 %v3096_v60  ;;  %v3119_v10 = vld [vmem:[%s4475_s4 + $0xb4] ss:$8 sps:$4 sm:$0xff]   ;;  %v3117_v11 = vld [vmem:[%s4475_s4 + $0xb0] ss:$8 sps:$4 sm:$0xff]   ;;  %v3122_v12 = vld [vmem:[%s4475_s4 + $0xa4] ss:$8 sps:$4 sm:$0xff]  }
  0x89   :  { %1053 = vmatprep.subr.bf16.mxu1 %v3101_v61  ;;  %v3120_v13 = vld [vmem:[%s4475_s4 + $0xa0] ss:$8 sps:$4 sm:$0xff]   ;;  %v3125_v14 = vld [vmem:[%s4475_s4 + $0x94] ss:$8 sps:$4 sm:$0xff]   ;;  %v3123_v15 = vld [vmem:[%s4475_s4 + $0x90] ss:$8 sps:$4 sm:$0xff]  }
  0x8a   :  { %v3128_v16 = vld [vmem:[%s4475_s4 + $0x84] ss:$8 sps:$4 sm:$0xff]   ;;  %v3126_v17 = vld [vmem:[%s4475_s4 + $0x80] ss:$8 sps:$4 sm:$0xff]   ;;  %v3129_v18 = vld [vmem:[%s4477_s6 + $0x78] sm:$0xff]   ;;  %v3938_v42 = vshrl.u32 %v165_v41, 7 }
  0x8b   :  { %v3130_v19 = vld [vmem:[%s4477_s6 + $0x38] sm:$0xff]   ;;  %v3131_v20 = vld [vmem:[%s4477_s6 + $0x70] sm:$0xff]   ;;  %2883 = vmatprep.subr.bf16.mxu0 %v3129_v18  ;;  %v3133_v22 = vld [vmem:[%s4477_s6 + $0x68] sm:$0xff]   ;;  %s3407_s2 = smov 126   ;;  %vm2563_vm1 = vcmask 125952  }
  0x8c   :  { %1054 = vmatpush1.bf16.msra.mxu1 %v3099_v62  ;;  %2884 = vmatpush3.bf16.msra.mxu0 %v3130_v19  ;;  %v3132_v21 = vld [vmem:[%s4477_s6 + $0x30] sm:$0xff]   ;;  %v3134_v23 = vld [vmem:[%s4477_s6 + $0x28] sm:$0xff]   ;;  %v3135_v24 = vld [vmem:[%s4477_s6 + $0x60] sm:$0xff]   ;;  %v3941_v43 = vsub.s32 0, %v3938_v42  ;;  %v3947_v45 = vsub.s32 1, %v3938_v42 }
  0x8d   :  { %1055 = vmatprep.subr.bf16.mxu1 %v3104_v63  ;;  %2885 = vmatprep.subr.bf16.mxu0 %v3131_v20  ;;  %v3136_v2 = vld [vmem:[%s4477_s6 + $0x20] sm:$0xff]   ;;  %v3137_v25 = vld [vmem:[%s4477_s6 + $0x58] sm:$0xff]   ;;  %v3139_v27 = vld [vmem:[%s4477_s6 + $0x50] sm:$0xff]  }
  0x8e   :  { %v3138_v26 = vld [vmem:[%s4477_s6 + $0x18] sm:$0xff]   ;;  %v3140_v28 = vld [vmem:[%s4477_s6 + $0x10] sm:$0xff]   ;;  %v163_v44 = vld [vmem:[%s4474_s3] sm:$0x3] }
  0x8f   :  { %v168_v46 = vrot.slane %v163_v44, %v3941_v43  ;;  %v172_v47 = vrot.slane %v163_v44, %v3947_v45  ;;  %v2714_v19 = vld [vmem:[%s4478_s7] ss:$0 sm:$0xff]  ;;  %v3163_v41 = vld [vmem:[%s4481_s10 + $0x10] ss:$8 sps:$4 sm:$0xff]   ;;  %v3168_v44 = vld [vmem:[%s4481_s10 + $0x4] ss:$8 sps:$4 sm:$0xff]  }
  0x90   :  { %1056 = vmatpush1.bf16.msra.mxu1 %v3102_v0  ;;  %2886 = vmatpush3.bf16.msra.mxu0 %v3132_v21  ;;  %v3141_v0 = vld [vmem:[%s4477_s6 + $0x48] sm:$0xff]  }
  0x91   :  { %1057 = vmatprep.subr.bf16.mxu1 %v3107_v1  ;;  %2887 = vmatprep.subr.bf16.mxu0 %v3133_v22  ;;  %v3142_v1 = vld [vmem:[%s4477_s6 + $0x8] sm:$0xff]  }
  0x94   :  { %1058 = vmatpush2.bf16.msra.mxu1 %v3105_v3  ;;  %2888 = vmatpush3.bf16.msra.mxu0 %v3134_v23  ;;  %v3143_v3 = vld [vmem:[%s4477_s6 + $0x40] sm:$0xff]  }
  0x95   :  { %1059 = vmatprep.subr.bf16.mxu1 %v3110_v4  ;;  %2889 = vmatprep.subr.bf16.mxu0 %v3135_v24  ;;  %v3144_v4 = vld [vmem:[%s4477_s6] sm:$0xff]  }
  0x98   :  { %1060 = vmatpush2.bf16.msra.mxu1 %v3108_v5  ;;  %2890 = vmatpush3.bf16.msra.mxu0 %v3136_v2  ;;  %v869_v5 = vld [vmem:[%s4476_s5] sm:$0x3] }
  0x99   :  { %1061 = vmatprep.subr.bf16.mxu1 %v3113_v6  ;;  %2891 = vmatprep.subr.bf16.mxu0 %v3137_v25  ;;  %v874_v6 = vrot.slane %v869_v5, %v3941_v43 }
  0x9c   :  { %1062 = vmatpush2.bf16.msra.mxu1 %v3111_v7  ;;  %2892 = vmatpush3.bf16.msra.mxu0 %v3138_v26  ;;  %v878_v7 = vrot.slane %v869_v5, %v3947_v45  ;;  %v3406_v26 = vmov 1   ;;  %v3195_v5 = vld [vmem:[%s4483_s12 + $0x18c] ss:$28 sps:$4 sm:$0xff]  }
  0x9d   :  { %1063 = vmatprep.subr.bf16.mxu1 %v3116_v8  ;;  %2893 = vmatprep.subr.bf16.mxu0 %v3139_v27  ;;  %v3145_v27 = vld [vmem:[%s4481_s10 + $0x70] ss:$8 sps:$4 sm:$0xff]  }
  0x9e   :  { %2932 = vset.pattern.permute.xlu1 %v3406_v26 }
  0xa0   :  { %1064 = vmatpush2.bf16.msra.mxu1 %v3114_v9  ;;  %2894 = vmatpush3.bf16.msra.mxu0 %v3140_v28  ;;  %v3147_v28 = vld [vmem:[%s4481_s10 + $0x74] ss:$8 sps:$4 sm:$0xff]  }
  0xa1   :  { %1065 = vmatprep.subr.bf16.mxu1 %v3119_v10  ;;  %2895 = vmatprep.subr.bf16.mxu0 %v3141_v0  ;;  %v3187_v0 = vld [vmem:[%s4481_s10 + $0x90] ss:$8 sps:$4 sm:$0xff]  }
  0xa4   :  { %1066 = vmatpush2.bf16.msra.mxu1 %v3117_v11  ;;  %2896 = vmatpush3.bf16.msra.mxu0 %v3142_v1  ;;  %v3192_v1 = vld [vmem:[%s4481_s10 + $0x84] ss:$8 sps:$4 sm:$0xff]  }
  0xa5   :  { %1067 = vmatprep.subr.bf16.mxu1 %v3122_v12  ;;  %2897 = vmatprep.subr.bf16.mxu0 %v3143_v3  ;;  %v3190_v3 = vld [vmem:[%s4481_s10 + $0x80] ss:$8 sps:$4 sm:$0xff]  }
  0xa8   :  { %1068 = vmatpush2.bf16.msra.mxu1 %v3120_v13  ;;  %2898 = vmatpush3.bf16.msra.mxu0 %v3144_v4  ;;  %v3193_v4 = vld [vmem:[%s4483_s12 + $0x188] ss:$28 sps:$4 sm:$0xff]  }
  0xa9   :  { %1069 = vmatprep.subr.bf16.mxu1 %v3125_v14  ;;  %2333 = vmatprep.subr.bf16.mxu0 %v3195_v5  ;;  %v3216_v5 = vld [vmem:[%s4483_s12 + $0xec] ss:$28 sps:$4 sm:$0xff]  }
  0xac   :  { %1070 = vmatpush2.bf16.msra.mxu1 %v3123_v15 }
  0xad   :  { %1071 = vmatprep.subr.bf16.mxu1 %v3128_v16 }
  0xb0   :  { %1072 = vmatpush2.bf16.msra.mxu1 %v3126_v17 }
  0xb1   :  { %1547 = vmatprep.subr.bf16.mxu1 %v3147_v28  ;;  %v3267_v28 = vld [vmem:[%s4483_s12 + $0x26c] ss:$28 sps:$4 sm:$0xff]  }
 0x102   :  { %v703_v29 = vpop.f32.mrf.mxu0 }
 0x103   :  { %v744_v31 = vpop.f32.mrf.mxu1  ;;  %v704_v48 = vadd.f32 %v703_v29, %v168_v46  ;;  %v3150_v29 = vld [vmem:[%s4481_s10 + $0x64] ss:$8 sps:$4 sm:$0xff]   ;;  %v3166_v46 = vld [vmem:[%s4481_s10] ss:$8 sps:$4 sm:$0xff]  }
 0x104   :  { %v705_v30 = vpop.f32.mrf.mxu0 }
 0x105   :  { %v746_v33 = vpop.f32.mrf.mxu1  ;;  %v706_v49 = vadd.f32 %v705_v30, %v172_v47  ;;  %v745_v50 = vadd.f32 %v744_v31, %v704_v48  ;;  %v3148_v30 = vld [vmem:[%s4481_s10 + $0x60] ss:$8 sps:$4 sm:$0xff]   ;;  %v3153_v31 = vld [vmem:[%s4481_s10 + $0x54] ss:$8 sps:$4 sm:$0xff]   ;;  %v3169_v48 = vld [vmem:[%s4481_s10 + $0xf0] ss:$8 sps:$4 sm:$0xff]  }
 0x106   :  { %v707_v32 = vpop.f32.mrf.mxu0  ;;  %v3171_v47 = vld [vmem:[%s4481_s10 + $0xf4] ss:$8 sps:$4 sm:$0xff]  }
 0x107   :  { %v748_v35 = vpop.f32.mrf.mxu1  ;;  %v747_v52 = vadd.f32 %v746_v33, %v706_v49  ;;  %v3151_v32 = vld [vmem:[%s4481_s10 + $0x50] ss:$8 sps:$4 sm:$0xff]   ;;  %v3174_v49 = vld [vmem:[%s4481_s10 + $0xe4] ss:$8 sps:$4 sm:$0xff]  }
 0x108   :  { %v708_v34 = vpop.f32.mrf.mxu0  ;;  %v3154_v35 = vld [vmem:[%s4481_s10 + $0x40] ss:$8 sps:$4 sm:$0xff]  }
 0x109   :  { %v749_v36 = vpop.f32.mrf.mxu1  ;;  %v3156_v34 = vld [vmem:[%s4481_s10 + $0x44] ss:$8 sps:$4 sm:$0xff]  }
 0x10a   :  { %v3159_v36 = vld [vmem:[%s4481_s10 + $0x34] ss:$8 sps:$4 sm:$0xff]  }
 0x10b   :  { %v826_v37 = vpop.f32.mrf.mxu1 }
 0x10d   :  { %v828_v38 = vpop.f32.mrf.mxu1 }
 0x10f   :  { %v830_v39 = vpop.f32.mrf.mxu1 }
 0x110   :  { %v3160_v39 = vld [vmem:[%s4481_s10 + $0x20] ss:$8 sps:$4 sm:$0xff]  }
 0x111   :  { %v831_v40 = vpop.f32.mrf.mxu1 }
 0x112   :  { %v3165_v40 = vld [vmem:[%s4481_s10 + $0x14] ss:$8 sps:$4 sm:$0xff]  }
 0x142   :  { %v785_v51 = vpop.f32.mrf.mxu0 }
 0x143   :  { %v786_v53 = vadd.f32 %v785_v51, %v745_v50  ;;  %v3172_v50 = vld [vmem:[%s4481_s10 + $0xe0] ss:$8 sps:$4 sm:$0xff]   ;;  %v3177_v51 = vld [vmem:[%s4481_s10 + $0xd4] ss:$8 sps:$4 sm:$0xff]  }
 0x144   :  { %v787_v54 = vpop.f32.mrf.mxu0 }
 0x145   :  { %v827_v55 = vadd.f32 %v826_v37, %v786_v53  ;;  %v788_v56 = vadd.f32 %v787_v54, %v747_v52  ;;  %v3157_v37 = vld [vmem:[%s4481_s10 + $0x30] ss:$8 sps:$4 sm:$0xff]   ;;  %v3180_v53 = vld [vmem:[%s4481_s10 + $0xc4] ss:$8 sps:$4 sm:$0xff]   ;;  %v3178_v54 = vld [vmem:[%s4481_s10 + $0xc0] ss:$8 sps:$4 sm:$0xff]  }
 0x146   :  { %v789_v57 = vpop.f32.mrf.mxu0  ;;  %v3175_v52 = vld [vmem:[%s4481_s10 + $0xd0] ss:$8 sps:$4 sm:$0xff]  }
 0x147   :  { %v829_v58 = vadd.f32 %v828_v38, %v788_v56  ;;  %v833_v59 = vmax.f32 %v827_v55, 0.0  ;;  %v3162_v38 = vld [vmem:[%s4481_s10 + $0x24] ss:$8 sps:$4 sm:$0xff]   ;;  %v3183_v55 = vld [vmem:[%s4481_s10 + $0xb4] ss:$8 sps:$4 sm:$0xff]  }
 0x148   :  { %v790_v60 = vpop.f32.mrf.mxu0  ;;  %v3181_v56 = vld [vmem:[%s4481_s10 + $0xb0] ss:$8 sps:$4 sm:$0xff]   ;;  %v3186_v57 = vld [vmem:[%s4481_s10 + $0xa4] ss:$8 sps:$4 sm:$0xff]  }
 0x149   :  { %v834_v61 = vmax.f32 %v829_v58, 0.0  ;;  %v835_v63 = vpack.c.bf16 %v833_v59, %v833_v59  ;;  %v3184_v58 = vld [vmem:[%s4481_s10 + $0xa0] ss:$8 sps:$4 sm:$0xff]  }
 0x14a   :  { %v1262_v59 = vld [vmem:[%s4472_s1] sm:$0xff] }
 0x14b   :  { %v836_v62 = vpack.c.bf16 %v834_v61, %v834_v61 }
 0x14d   :  { %1073 = vmatprep.mubr.bf16.mxu1 %v836_v62  ;;  %v3189_v62 = vld [vmem:[%s4481_s10 + $0x94] ss:$8 sps:$4 sm:$0xff]  }
 0x14e   :  { %1074 = vmatmul.mubr.bf16.vlgmr.msra.gmra.mxu1 %v835_v63 }
 0x14f   :  { %1548 = vmatpush1.bf16.msra.mxu1 %v3145_v27  ;;  %v3259_v27 = vld [vmem:[%s4483_s12 + $0x2a0] ss:$28 sps:$4 sm:$0xff]  }
 0x150   :  { %1549 = vmatprep.subr.bf16.mxu1 %v3150_v29  ;;  %v3265_v29 = vld [vmem:[%s4483_s12 + $0x268] ss:$28 sps:$4 sm:$0xff]  }
 0x153   :  { %1550 = vmatpush1.bf16.msra.mxu1 %v3148_v30  ;;  %v3273_v30 = vld [vmem:[%s4483_s12 + $0x234] ss:$28 sps:$4 sm:$0xff]  }
 0x154   :  { %1551 = vmatprep.subr.bf16.mxu1 %v3153_v31  ;;  %v3271_v31 = vld [vmem:[%s4483_s12 + $0x230] ss:$28 sps:$4 sm:$0xff]  }
 0x157   :  { %1552 = vmatpush1.bf16.msra.mxu1 %v3151_v32  ;;  %v1309_v32 = vsub.s32 3, %v3938_v42 }
 0x158   :  { %1553 = vmatprep.subr.bf16.mxu1 %v3156_v34  ;;  %v1272_v34 = vld [vmem:[%s4479_s8] sm:$0xf] }
 0x15b   :  { %1554 = vmatpush1.bf16.msra.mxu1 %v3154_v35  ;;  %v1306_v35 = vrot.slane %v1272_v34, %v3947_v45 }
 0x15c   :  { %1555 = vmatprep.subr.bf16.mxu1 %v3159_v36  ;;  %v1310_v36 = vrot.slane %v1272_v34, %v1309_v32 }
 0x15f   :  { %1556 = vmatpush1.bf16.msra.mxu1 %v3157_v37  ;;  %v1282_v37 = vrot.slane %v1272_v34, %v3941_v43 }
 0x160   :  { %1557 = vmatprep.subr.bf16.mxu1 %v3162_v38 }
 0x163   :  { %1558 = vmatpush1.bf16.msra.mxu1 %v3160_v39  ;;  %v1316_v39 = vrot.slane %v1306_v35, %v3947_v45  ;;  %v3286_v35 = vld [vmem:[%s4483_s12 + $0x1c8] ss:$28 sps:$4 sm:$0xff]  }
 0x164   :  { %1559 = vmatprep.subr.bf16.mxu1 %v3165_v40  ;;  %v1320_v40 = vrot.slane %v1310_v36, %v3947_v45  ;;  %v3291_v36 = vld [vmem:[%s4483_s12 + $0x19c] ss:$28 sps:$4 sm:$0xff]  }
 0x167   :  { %1560 = vmatpush1.bf16.msra.mxu1 %v3163_v41  ;;  %v1292_v41 = vrot.slane %v1282_v37, %v3941_v43  ;;  %v3292_v37 = vld [vmem:[%s4483_s12 + $0x360] ss:$28 sps:$4 sm:$0xff]  }
 0x168   :  { %1561 = vmatprep.subr.bf16.mxu1 %v3168_v44 }
 0x16b   :  { %1562 = vmatpush1.bf16.msra.mxu1 %v3166_v46  ;;  %v1325_v46 = vld [vmem:[%s4480_s9] sm:$0x3] }
 0x16c   :  { %1563 = vmatprep.subr.bf16.mxu1 %v3171_v47 }
 0x16f   :  { %1564 = vmatpush2.bf16.msra.mxu1 %v3169_v48  ;;  %v1330_v48 = vrot.slane %v1325_v46, %v3941_v43 }
 0x170   :  { %1565 = vmatprep.subr.bf16.mxu1 %v3174_v49  ;;  %v1334_v49 = vrot.slane %v1325_v46, %v3947_v45 }
 0x173   :  { %1566 = vmatpush2.bf16.msra.mxu1 %v3172_v50 }
 0x174   :  { %1567 = vmatprep.subr.bf16.mxu1 %v3177_v51 }
 0x177   :  { %1568 = vmatpush2.bf16.msra.mxu1 %v3175_v52 }
 0x178   :  { %1569 = vmatprep.subr.bf16.mxu1 %v3180_v53 }
 0x17b   :  { %1570 = vmatpush2.bf16.msra.mxu1 %v3178_v54 }
 0x17c   :  { %1571 = vmatprep.subr.bf16.mxu1 %v3183_v55 }
 0x17f   :  { %1572 = vmatpush2.bf16.msra.mxu1 %v3181_v56 }
 0x180   :  { %1573 = vmatprep.subr.bf16.mxu1 %v3186_v57 }
 0x183   :  { %1574 = vmatpush2.bf16.msra.mxu1 %v3184_v58 }
 0x184   :  { %1575 = vmatprep.subr.bf16.mxu1 %v3189_v62 }
 0x187   :  { %1576 = vmatpush2.bf16.msra.mxu1 %v3187_v0  ;;  %v3204_v0 = vld [vmem:[%s4483_s12 + $0x15c] ss:$28 sps:$4 sm:$0xff]  }
 0x188   :  { %1577 = vmatprep.subr.bf16.mxu1 %v3192_v1  ;;  %v3202_v1 = vld [vmem:[%s4483_s12 + $0x158] ss:$28 sps:$4 sm:$0xff]  }
 0x18b   :  { %1578 = vmatpush2.bf16.msra.mxu1 %v3190_v3  ;;  %v3210_v3 = vld [vmem:[%s4483_s12 + $0x124] ss:$28 sps:$4 sm:$0xff]  }
 0x20e   :  { %v1075_v8 = vpop.f32.mrf.mxu1 }
 0x20f   :  { %v1076_v9 = vadd.f32 %v1075_v8, %v874_v6  ;;  %v3198_v6 = vld [vmem:[%s4483_s12 + $0x194] ss:$28 sps:$4 sm:$0xff]  }
 0x210   :  { %v1077_v10 = vpop.f32.mrf.mxu1  ;;  %2374 = vmatprep.subr.bf16.mxu1 %v3198_v6  ;;  %v3199_v8 = vld [vmem:[%s4483_s12 + $0x150] ss:$28 sps:$4 sm:$0xff]   ;;  %v3214_v6 = vld [vmem:[%s4483_s12 + $0xe8] ss:$28 sps:$4 sm:$0xff]  }
 0x211   :  { %v1078_v11 = vadd.f32 %v1077_v10, %v878_v7  ;;  %v1082_v12 = vmax.f32 %v1076_v9, 0.0  ;;  %v3201_v7 = vld [vmem:[%s4483_s12 + $0x154] ss:$28 sps:$4 sm:$0xff]   ;;  %v3207_v9 = vld [vmem:[%s4483_s12 + $0x11c] ss:$28 sps:$4 sm:$0xff]  }
 0x212   :  { %v1079_v13 = vpop.f32.mrf.mxu1  ;;  %v3205_v10 = vld [vmem:[%s4483_s12 + $0x118] ss:$28 sps:$4 sm:$0xff]  }
 0x213   :  { %v1083_v14 = vmax.f32 %v1078_v11, 0.0  ;;  %v1084_v17 = vpack.c.bf16 %v1082_v12, %v1082_v12  ;;  %v3213_v11 = vld [vmem:[%s4483_s12 + $0xe4] ss:$28 sps:$4 sm:$0xff]   ;;  %v3219_v13 = vld [vmem:[%s4483_s12 + $0xac] ss:$28 sps:$4 sm:$0xff]  }
 0x214   :  { %v1080_v15 = vpop.f32.mrf.mxu1  ;;  %v3211_v12 = vld [vmem:[%s4483_s12 + $0xe0] ss:$28 sps:$4 sm:$0xff]  }
 0x215   :  { %v1085_v16 = vpack.c.bf16 %v1083_v14, %v1083_v14  ;;  %v3217_v14 = vld [vmem:[%s4483_s12 + $0xa8] ss:$28 sps:$4 sm:$0xff]   ;;  %v3225_v15 = vld [vmem:[%s4483_s12 + $0x74] ss:$28 sps:$4 sm:$0xff]  }
 0x217   :  { %1253 = vmatprep.mubr.bf16.mxu0 %v1085_v16  ;;  %v3223_v16 = vld [vmem:[%s4483_s12 + $0x70] ss:$28 sps:$4 sm:$0xff]  }
 0x218   :  { %1254 = vmatmul.mubr.bf16.vlgmr.msra.gmra.mxu0 %v1084_v17  ;;  %v3231_v17 = vld [vmem:[%s4483_s12 + $0x3c] ss:$28 sps:$4 sm:$0xff]  }
 0x219   :  { %2334 = vmatpush1.bf16.msra.mxu0 %v3193_v4  ;;  %v3208_v4 = vld [vmem:[%s4483_s12 + $0x120] ss:$28 sps:$4 sm:$0xff]  }
 0x21a   :  { %2335 = vmatprep.subr.bf16.mxu0 %v3201_v7  ;;  %v3222_v7 = vld [vmem:[%s4483_s12 + $0xb4] ss:$28 sps:$4 sm:$0xff]  }
 0x21d   :  { %2336 = vmatpush1.bf16.msra.mxu0 %v3199_v8  ;;  %v3220_v8 = vld [vmem:[%s4483_s12 + $0xb0] ss:$28 sps:$4 sm:$0xff]  }
 0x21e   :  { %2337 = vmatprep.subr.bf16.mxu0 %v3207_v9  ;;  %v3228_v9 = vld [vmem:[%s4483_s12 + $0x7c] ss:$28 sps:$4 sm:$0xff]  }
 0x221   :  { %2338 = vmatpush1.bf16.msra.mxu0 %v3205_v10  ;;  %v3226_v10 = vld [vmem:[%s4483_s12 + $0x78] ss:$28 sps:$4 sm:$0xff]  }
 0x222   :  { %2339 = vmatprep.subr.bf16.mxu0 %v3213_v11  ;;  %v3234_v11 = vld [vmem:[%s4483_s12 + $0x44] ss:$28 sps:$4 sm:$0xff]  }
 0x225   :  { %2340 = vmatpush1.bf16.msra.mxu0 %v3211_v12  ;;  %v3232_v12 = vld [vmem:[%s4483_s12 + $0x40] ss:$28 sps:$4 sm:$0xff]  }
 0x226   :  { %2341 = vmatprep.subr.bf16.mxu0 %v3219_v13  ;;  %v3240_v13 = vld [vmem:[%s4483_s12 + $0xc] ss:$28 sps:$4 sm:$0xff]  }
 0x229   :  { %2342 = vmatpush1.bf16.msra.mxu0 %v3217_v14  ;;  %v3238_v14 = vld [vmem:[%s4483_s12 + $0x8] ss:$28 sps:$4 sm:$0xff]  }
 0x22a   :  { %2343 = vmatprep.subr.bf16.mxu0 %v3225_v15  ;;  %v3246_v15 = vld [vmem:[%s4483_s12 + $0x354] ss:$28 sps:$4 sm:$0xff]  }
 0x22d   :  { %2344 = vmatpush1.bf16.msra.mxu0 %v3223_v16  ;;  %v3244_v16 = vld [vmem:[%s4483_s12 + $0x350] ss:$28 sps:$4 sm:$0xff]  }
 0x22e   :  { %2345 = vmatprep.subr.bf16.mxu0 %v3231_v17  ;;  %v3252_v17 = vld [vmem:[%s4483_s12 + $0x31c] ss:$28 sps:$4 sm:$0xff]  }
 0x2d8   :  { %v2899_v18 = vpop.f32.mrf.mxu0 }
 0x2da   :  { %v2900_v20 = vpop.f32.mrf.mxu0 }
 0x2db   :  { %v2901_v21 = vadd.f32 %v2900_v20, %v2899_v18  ;;  %v3229_v18 = vld [vmem:[%s4483_s12 + $0x38] ss:$28 sps:$4 sm:$0xff]   ;;  %v3235_v20 = vld [vmem:[%s4483_s12] ss:$28 sps:$4 sm:$0xff]  }
 0x2dc   :  { %v2902_v22 = vpop.f32.mrf.mxu0  ;;  %2346 = vmatpush1.bf16.msra.mxu0 %v3229_v18  ;;  %v3250_v18 = vld [vmem:[%s4483_s12 + $0x318] ss:$28 sps:$4 sm:$0xff]  }
 0x2dd   :  { %v3971_v23 = vadd.f32 %v2901_v21, %v2714_v19  ;;  %v3237_v19 = vld [vmem:[%s4483_s12 + $0x4] ss:$28 sps:$4 sm:$0xff]   ;;  %v3243_v21 = vld [vmem:[%s4483_s12 + $0x34c] ss:$28 sps:$4 sm:$0xff]  }
 0x2de   :  { %v2903_v24 = vpop.f32.mrf.mxu0  ;;  %2347 = vmatprep.subr.bf16.mxu0 %v3237_v19  ;;  %v3241_v22 = vld [vmem:[%s4483_s12 + $0x348] ss:$28 sps:$4 sm:$0xff]  }
 0x2df   :  { %1261 = vst [vmem:[%s4486_s15] sm:$0xff] %v3971_v23  ;;  %v1263_v2 = vmul.f32 0.5, %v3971_v23  ;;  %v3247_v24 = vld [vmem:[%s4483_s12 + $0x310] ss:$28 sps:$4 sm:$0xff]   ;;  %v3258_v19 = vld [vmem:[%s4483_s12 + $0x2e4] ss:$28 sps:$4 sm:$0xff]  }
 0x2e0   :  { %2348 = vmatpush1.bf16.msra.mxu0 %v3235_v20  ;;  %v3256_v20 = vld [vmem:[%s4483_s12 + $0x2e0] ss:$28 sps:$4 sm:$0xff]  }
 0x2e1   :  { %v1264_v25 = vmul.f32 1.442695, %v1263_v2  ;;  %2349 = vmatprep.subr.bf16.mxu0 %v3243_v21  ;;  %v3255_v2 = vld [vmem:[%s4483_s12 + $0x2dc] ss:$28 sps:$4 sm:$0xff]   ;;  %v3264_v21 = vld [vmem:[%s4483_s12 + $0x2ac] ss:$28 sps:$4 sm:$0xff]  }
 0x2e3   :  { %3353 = vpow2.f32 %v1264_v25  ;;  %v3253_v25 = vld [vmem:[%s4483_s12 + $0x2d8] ss:$28 sps:$4 sm:$0xff]  }
 0x2e4   :  { %2350 = vmatpush2.bf16.msra.mxu0 %v3241_v22  ;;  %v3262_v22 = vld [vmem:[%s4483_s12 + $0x2a8] ss:$28 sps:$4 sm:$0xff]  }
 0x2f0   :  { %v3354_v33 = vpop.eup %3353 }
 0x2f1   :  { %1267 = vrot.lane.b32.xlu0 %v3354_v33, %s3407_s2  ;;  %v1285_v33 = vsub.s32 2, %v3938_v42 }
 0x2f3   :  { %v1286_v38 = vrot.slane %v1272_v34, %v1285_v33  ;;  %v3283_v34 = vld [vmem:[%s4483_s12 + $0x1c0] ss:$28 sps:$4 sm:$0xff]  }
 0x2f5   :  { %v1296_v44 = vrot.slane %v1286_v38, %v3941_v43  ;;  %v1375_v38 = vld [vmem:[%s4482_s11] sm:$0x3] }
 0x363   :  { %v1268_v60 = vpop.permute.xlu0 %1267 }
 0x364   :  { %v1270_v61 = vmul.f32 %v1268_v60, %v1262_v59 }
 0x366   :  { %v1271_v63 = vadd.f32 %v1270_v61, %v3971_v23  ;;  %v3249_v23 = vld [vmem:[%s4483_s12 + $0x314] ss:$28 sps:$4 sm:$0xff]  }
 0x367   :  { %2351 = vmatprep.subr.bf16.mxu0 %v3249_v23  ;;  %v3270_v23 = vld [vmem:[%s4483_s12 + $0x274] ss:$28 sps:$4 sm:$0xff]  }
 0x368   :  { %1300 = vperm.xlu1 %2932, %v1271_v63   ;;  %1275 = vperm.xlu0 %2931, %v1271_v63   ;;  %v3196_v63 = vld [vmem:[%s4483_s12 + $0x190] ss:$28 sps:$4 sm:$0xff]  }
 0x369   :  { %2352 = vmatpush2.bf16.msra.mxu0 %v3247_v24  ;;  %v3268_v24 = vld [vmem:[%s4483_s12 + $0x270] ss:$28 sps:$4 sm:$0xff]  }
 0x36a   :  { %2353 = vmatprep.subr.bf16.mxu0 %v3255_v2  ;;  %v3276_v2 = vld [vmem:[%s4483_s12 + $0x23c] ss:$28 sps:$4 sm:$0xff]  }
 0x36c   :  { %2933 = vset.pattern.permute.xlu0 %v3406_v26  ;;  %v3261_v26 = vld [vmem:[%s4483_s12 + $0x2a4] ss:$28 sps:$4 sm:$0xff]  }
 0x36d   :  { %2354 = vmatpush2.bf16.msra.mxu0 %v3253_v25  ;;  %v3274_v25 = vld [vmem:[%s4483_s12 + $0x238] ss:$28 sps:$4 sm:$0xff]  }
 0x36e   :  { %2355 = vmatprep.subr.bf16.mxu0 %v3261_v26  ;;  %v3279_v26 = vld [vmem:[%s4483_s12 + $0x1fc] ss:$28 sps:$4 sm:$0xff]  }
 0x371   :  { %2356 = vmatpush2.bf16.msra.mxu0 %v3259_v27  ;;  %v3282_v27 = vld [vmem:[%s4483_s12 + $0x204] ss:$28 sps:$4 sm:$0xff]  }
 0x372   :  { %2357 = vmatprep.subr.bf16.mxu0 %v3267_v28  ;;  %v3277_v28 = vld [vmem:[%s4483_s12 + $0x1f8] ss:$28 sps:$4 sm:$0xff]  }
 0x375   :  { %2358 = vmatpush2.bf16.msra.mxu0 %v3265_v29  ;;  %v3280_v29 = vld [vmem:[%s4483_s12 + $0x200] ss:$28 sps:$4 sm:$0xff]  }
 0x376   :  { %2359 = vmatprep.subr.bf16.mxu0 %v3273_v30  ;;  %v3285_v30 = vld [vmem:[%s4483_s12 + $0x1c4] ss:$28 sps:$4 sm:$0xff]  }
 0x379   :  { %2360 = vmatpush2.bf16.msra.mxu0 %v3271_v31  ;;  %v3288_v31 = vld [vmem:[%s4483_s12 + $0x1cc] ss:$28 sps:$4 sm:$0xff]  }
 0x37a   :  { %2361 = vmatprep.subr.bf16.mxu0 %v3279_v26  ;;  %v3340_v26 = vld [vmem:[%s4483_s12 + $0x2b4] ss:$28 sps:$4 sm:$0xff]  }
 0x37d   :  { %2362 = vmatpush2.bf16.msra.mxu0 %v3277_v28  ;;  %v3343_v28 = vld [vmem:[%s4483_s12 + $0x27c] ss:$28 sps:$4 sm:$0xff]  }
 0x37e   :  { %2363 = vmatprep.subr.bf16.mxu0 %v3285_v30  ;;  %v3346_v30 = vld [vmem:[%s4483_s12 + $0x244] ss:$28 sps:$4 sm:$0xff]  }
 0x381   :  { %2364 = vmatpush2.bf16.msra.mxu0 %v3283_v34  ;;  %v3349_v34 = vld [vmem:[%s4483_s12 + $0x20c] ss:$28 sps:$4 sm:$0xff]  }
 0x382   :  { %2415 = vmatprep.subr.bf16.mxu0 %v3291_v36  ;;  %v3352_v36 = vld [vmem:[%s4483_s12 + $0x1d4] ss:$28 sps:$4 sm:$0xff]  }
 0x3e3   :  { %v1301_v47 = vpop.permute.xlu1 %1300  ;;  %v1276_v50 = vpop.permute.xlu0 %1275 }
 0x3e4   :  { %v1321_v51 = vmul.f32 %v1316_v39, %v1301_v47  ;;  %v1322_v52 = vmul.f32 %v1320_v40, %v1301_v47  ;;  %v1297_v53 = vmul.f32 %v1292_v41, %v1276_v50  ;;  %v1298_v54 = vmul.f32 %v1296_v44, %v1276_v50 }
 0x3e5   :  { %v1380_v39 = vrot.slane %v1375_v38, %v3941_v43  ;;  %v1384_v40 = vrot.slane %v1375_v38, %v3947_v45  ;;  %v4450_v38 = vld [vmem:[%s4484_s13] sm:$0x7f] }
 0x3e6   :  { %v1323_v55 = vadd.f32 %v1321_v51, %v1297_v53  ;;  %v1324_v56 = vadd.f32 %v1322_v52, %v1298_v54  ;;  %v3289_v53 = vld [vmem:[%s4483_s12 + $0x198] ss:$28 sps:$4 sm:$0xff]   ;;  %v3293_v54 = vld [vmem:[%s4483_s12 + $0x1a0] ss:$28 sps:$4 sm:$0xff]  }
 0x3e8   :  { %v1337_v57 = vadd.f32 %v1330_v48, %v1323_v55  ;;  %v1338_v58 = vadd.f32 %v1334_v49, %v1324_v56  ;;  %v3296_v56 = vld [vmem:[%s4483_s12 + $0x164] ss:$28 sps:$4 sm:$0xff]  }
 0x3ea   :  { %v1339_v59 = vmax.f32 %v1337_v57, 0.0  ;;  %v1340_v60 = vmax.f32 %v1338_v58, 0.0  ;;  %v3297_v57 = vld [vmem:[%s4483_s12 + $0x328] ss:$28 sps:$4 sm:$0xff]   ;;  %v3294_v58 = vld [vmem:[%s4483_s12 + $0x160] ss:$28 sps:$4 sm:$0xff]  }
 0x3ec   :  { %v1341_v61 = vpack.c.bf16 %v1339_v59, %v1339_v59  ;;  %v1342_v62 = vpack.c.bf16 %v1340_v60, %v1340_v60  ;;  %v3298_v59 = vld [vmem:[%s4483_s12 + $0x168] ss:$28 sps:$4 sm:$0xff]  }
 0x3ed   :  { %v3301_v60 = vld [vmem:[%s4483_s12 + $0x12c] ss:$28 sps:$4 sm:$0xff]  }
 0x3ee   :  { %1579 = vmatprep.mubr.bf16.mxu1 %v1342_v62  ;;  %v3299_v62 = vld [vmem:[%s4483_s12 + $0x128] ss:$28 sps:$4 sm:$0xff]  }
 0x3ef   :  { %1580 = vmatmul.mubr.bf16.vlgmr.msra.gmra.mxu1 %v1341_v61  ;;  %v3302_v61 = vld [vmem:[%s4483_s12 + $0x2f0] ss:$28 sps:$4 sm:$0xff]  }
 0x3f0   :  { %2375 = vmatpush1.bf16.msra.mxu1 %v3196_v63  ;;  %v3303_v63 = vld [vmem:[%s4483_s12 + $0x130] ss:$28 sps:$4 sm:$0xff]  }
 0x3f1   :  { %2376 = vmatprep.subr.bf16.mxu1 %v3204_v0  ;;  %v3306_v0 = vld [vmem:[%s4483_s12 + $0xf4] ss:$28 sps:$4 sm:$0xff]  }
 0x3f4   :  { %2377 = vmatpush1.bf16.msra.mxu1 %v3202_v1  ;;  %v3307_v1 = vld [vmem:[%s4483_s12 + $0x2b8] ss:$28 sps:$4 sm:$0xff]  }
 0x3f5   :  { %2378 = vmatprep.subr.bf16.mxu1 %v3210_v3  ;;  %v3304_v3 = vld [vmem:[%s4483_s12 + $0xf0] ss:$28 sps:$4 sm:$0xff]  }
 0x3f8   :  { %2379 = vmatpush1.bf16.msra.mxu1 %v3208_v4  ;;  %v3308_v4 = vld [vmem:[%s4483_s12 + $0xf8] ss:$28 sps:$4 sm:$0xff]  }
 0x3f9   :  { %2380 = vmatprep.subr.bf16.mxu1 %v3216_v5  ;;  %v3311_v5 = vld [vmem:[%s4483_s12 + $0xbc] ss:$28 sps:$4 sm:$0xff]  }
 0x3fc   :  { %2381 = vmatpush1.bf16.msra.mxu1 %v3214_v6  ;;  %v3312_v6 = vld [vmem:[%s4483_s12 + $0x280] ss:$28 sps:$4 sm:$0xff]  }
 0x3fd   :  { %2382 = vmatprep.subr.bf16.mxu1 %v3222_v7  ;;  %v3309_v7 = vld [vmem:[%s4483_s12 + $0xb8] ss:$28 sps:$4 sm:$0xff]  }
 0x400   :  { %2383 = vmatpush1.bf16.msra.mxu1 %v3220_v8  ;;  %v3313_v8 = vld [vmem:[%s4483_s12 + $0xc0] ss:$28 sps:$4 sm:$0xff]  }
 0x401   :  { %2384 = vmatprep.subr.bf16.mxu1 %v3228_v9  ;;  %v3316_v9 = vld [vmem:[%s4483_s12 + $0x84] ss:$28 sps:$4 sm:$0xff]  }
 0x404   :  { %2385 = vmatpush1.bf16.msra.mxu1 %v3226_v10  ;;  %v3317_v10 = vld [vmem:[%s4483_s12 + $0x248] ss:$28 sps:$4 sm:$0xff]  }
 0x405   :  { %2386 = vmatprep.subr.bf16.mxu1 %v3234_v11  ;;  %v3314_v11 = vld [vmem:[%s4483_s12 + $0x80] ss:$28 sps:$4 sm:$0xff]  }
 0x408   :  { %2387 = vmatpush1.bf16.msra.mxu1 %v3232_v12  ;;  %v3318_v12 = vld [vmem:[%s4483_s12 + $0x88] ss:$28 sps:$4 sm:$0xff]  }
 0x409   :  { %2388 = vmatprep.subr.bf16.mxu1 %v3240_v13  ;;  %v3321_v13 = vld [vmem:[%s4483_s12 + $0x4c] ss:$28 sps:$4 sm:$0xff]  }
 0x40c   :  { %2389 = vmatpush1.bf16.msra.mxu1 %v3238_v14  ;;  %v3322_v14 = vld [vmem:[%s4483_s12 + $0x210] ss:$28 sps:$4 sm:$0xff]  }
 0x40d   :  { %2390 = vmatprep.subr.bf16.mxu1 %v3246_v15  ;;  %v3319_v15 = vld [vmem:[%s4483_s12 + $0x48] ss:$28 sps:$4 sm:$0xff]  }
 0x410   :  { %2391 = vmatpush2.bf16.msra.mxu1 %v3244_v16  ;;  %v3323_v16 = vld [vmem:[%s4483_s12 + $0x50] ss:$28 sps:$4 sm:$0xff]  }
 0x411   :  { %2392 = vmatprep.subr.bf16.mxu1 %v3252_v17  ;;  %v3326_v17 = vld [vmem:[%s4483_s12 + $0x14] ss:$28 sps:$4 sm:$0xff]  }
 0x414   :  { %2393 = vmatpush2.bf16.msra.mxu1 %v3250_v18  ;;  %v3327_v18 = vld [vmem:[%s4483_s12 + $0x1d8] ss:$28 sps:$4 sm:$0xff]  }
 0x415   :  { %2394 = vmatprep.subr.bf16.mxu1 %v3258_v19  ;;  %v3324_v19 = vld [vmem:[%s4483_s12 + $0x10] ss:$28 sps:$4 sm:$0xff]  }
 0x418   :  { %2395 = vmatpush2.bf16.msra.mxu1 %v3256_v20  ;;  %v3328_v20 = vld [vmem:[%s4483_s12 + $0x18] ss:$28 sps:$4 sm:$0xff]  }
 0x419   :  { %2396 = vmatprep.subr.bf16.mxu1 %v3264_v21  ;;  %v3331_v21 = vld [vmem:[%s4483_s12 + $0x35c] ss:$28 sps:$4 sm:$0xff]  }
 0x41c   :  { %2397 = vmatpush2.bf16.msra.mxu1 %v3262_v22  ;;  %v3329_v22 = vld [vmem:[%s4483_s12 + $0x358] ss:$28 sps:$4 sm:$0xff]  }
 0x41d   :  { %2398 = vmatprep.subr.bf16.mxu1 %v3270_v23  ;;  %v3334_v23 = vld [vmem:[%s4483_s12 + $0x324] ss:$28 sps:$4 sm:$0xff]  }
 0x420   :  { %2399 = vmatpush2.bf16.msra.mxu1 %v3268_v24  ;;  %v3332_v24 = vld [vmem:[%s4483_s12 + $0x320] ss:$28 sps:$4 sm:$0xff]  }
 0x421   :  { %2400 = vmatprep.subr.bf16.mxu1 %v3276_v2  ;;  %v3337_v2 = vld [vmem:[%s4483_s12 + $0x2ec] ss:$28 sps:$4 sm:$0xff]  }
 0x424   :  { %2401 = vmatpush2.bf16.msra.mxu1 %v3274_v25  ;;  %v3335_v25 = vld [vmem:[%s4483_s12 + $0x2e8] ss:$28 sps:$4 sm:$0xff]  }
 0x425   :  { %2402 = vmatprep.subr.bf16.mxu1 %v3282_v27  ;;  %v3338_v27 = vld [vmem:[%s4483_s12 + $0x2b0] ss:$28 sps:$4 sm:$0xff]  }
 0x428   :  { %2403 = vmatpush2.bf16.msra.mxu1 %v3280_v29  ;;  %v3341_v29 = vld [vmem:[%s4483_s12 + $0x278] ss:$28 sps:$4 sm:$0xff]  }
 0x429   :  { %2404 = vmatprep.subr.bf16.mxu1 %v3288_v31  ;;  %v3344_v31 = vld [vmem:[%s4483_s12 + $0x240] ss:$28 sps:$4 sm:$0xff]  }
 0x42c   :  { %2405 = vmatpush2.bf16.msra.mxu1 %v3286_v35  ;;  %v3347_v35 = vld [vmem:[%s4483_s12 + $0x208] ss:$28 sps:$4 sm:$0xff]  }
 0x42d   :  { %2905 = vmatprep.subr.bf16.mxu1 %v3292_v37  ;;  %v3350_v37 = vld [vmem:[%s4483_s12 + $0x1d0] ss:$28 sps:$4 sm:$0xff]   ;;  %s3408_s12 = smov [#allocation2]  }
 0x42e   :  { %s2571_s13 = sshll.u32 %s3408_s12, 4  ;;  %s2572_s13 = int_to_ptr.vmem [resolvable:$true] %s2571_s13 }
 0x42f   :  { %s3383_s4 = scalar_lea.vmem %s2572_s13, 448  ;;  %p3388_p1 = scmp.lt.s32.totalorder %s2572_s13, %s2572_s13 }
 0x430   :  { %p3384_p0 = scmp.ne.s32.totalorder %s2572_s13, %s3383_s4  ;;  %p3389_p2 = scmp.lt.s32.totalorder %s3383_s4, %s3383_s4 }
 0x432   :  { %p3390_p3 = por %p3389_p2, %p3388_p1 }
 0x434   :  { %p3391_p4 = pnand %p3390_p3, %p3384_p0 }
 0x4af   :  { %v1581_v41 = vpop.f32.mrf.mxu1 }
 0x4b0   :  { %v1582_v44 = vadd.f32 %v1581_v41, %v1380_v39  ;;  %v1725_v39 = vrot.slane %v4450_v38, %v3941_v43  ;;  %v1729_v41 = vrot.slane %v4450_v38, %v3947_v45 }
 0x4b1   :  { %v1583_v46 = vpop.f32.mrf.mxu1 }
 0x4b2   :  { %v1584_v47 = vadd.f32 %v1583_v46, %v1384_v40  ;;  %v1588_v48 = vmax.f32 %v1582_v44, 0.0  ;;  %v1733_v40 = vrot.slane %v4450_v38, %v1285_v33  ;;  %v1737_v44 = vrot.slane %v4450_v38, %v1309_v32 }
 0x4b3   :  { %v1585_v49 = vpop.f32.mrf.mxu1 }
 0x4b4   :  { %v1589_v50 = vmax.f32 %v1584_v47, 0.0  ;;  %v4309_v55 = vpack.c.bf16 %v1588_v48, %v1588_v48 }
 0x4b5   :  { %v1586_v51 = vpop.f32.mrf.mxu1 }
 0x4b6   :  { %v1591_v52 = vpack.c.bf16 %v1589_v50, %v1589_v50 }
 0x4b8   :  { %2365 = vmatprep.mubr.bf16.mxu0 %v1591_v52  ;;  %2406 = vmatprep.mubr.bf16.mxu1 %v1591_v52 }
 0x4b9   :  { %2366 = vmatmul.mubr.bf16.vlgmr.msra.gmra.mxu0 %v4309_v55  ;;  %2407 = vmatmul.mubr.bf16.vlgmr.msra.gmra.mxu1 %v4309_v55 }
 0x4ba   :  { %2416 = vmatpush1.bf16.msra.mxu0 %v3289_v53  ;;  %2906 = vmatpush3.bf16.msra.mxu1 %v3293_v54 }
 0x4bb   :  { %2447 = vmatprep.mubr.bf16.mxu0 %v1591_v52  ;;  %2488 = vmatprep.mubr.bf16.mxu1 %v1591_v52 }
 0x4bc   :  { %2417 = vmatprep.subr.bf16.mxu0 %v3296_v56  ;;  %2907 = vmatprep.subr.bf16.mxu1 %v3297_v57 }
 0x4be   :  { %2418 = vmatpush1.bf16.msra.mxu0 %v3294_v58  ;;  %2908 = vmatpush3.bf16.msra.mxu1 %v3298_v59 }
 0x4bf   :  { %2419 = vmatprep.subr.bf16.mxu0 %v3301_v60  ;;  %2909 = vmatprep.subr.bf16.mxu1 %v3302_v61 }
 0x4c2   :  { %2420 = vmatpush1.bf16.msra.mxu0 %v3299_v62  ;;  %2910 = vmatpush3.bf16.msra.mxu1 %v3303_v63 }
 0x4c3   :  { %2421 = vmatprep.subr.bf16.mxu0 %v3306_v0  ;;  %2911 = vmatprep.subr.bf16.mxu1 %v3307_v1 }
 0x4c6   :  { %2422 = vmatpush1.bf16.msra.mxu0 %v3304_v3  ;;  %2912 = vmatpush3.bf16.msra.mxu1 %v3308_v4 }
 0x4c7   :  { %2423 = vmatprep.subr.bf16.mxu0 %v3311_v5  ;;  %2913 = vmatprep.subr.bf16.mxu1 %v3312_v6 }
 0x4ca   :  { %2424 = vmatpush1.bf16.msra.mxu0 %v3309_v7  ;;  %2914 = vmatpush3.bf16.msra.mxu1 %v3313_v8  ;;  %v1748_v7 = vsub.s32 6, %v3938_v42 }
 0x4cb   :  { %2425 = vmatprep.subr.bf16.mxu0 %v3316_v9  ;;  %2915 = vmatprep.subr.bf16.mxu1 %v3317_v10 }
 0x4cc   :  { %v1749_v9 = vrot.slane %v4450_v38, %v1748_v7 }
 0x4ce   :  { %2426 = vmatpush1.bf16.msra.mxu0 %v3314_v11  ;;  %2916 = vmatpush3.bf16.msra.mxu1 %v3318_v12 }
 0x4cf   :  { %2427 = vmatprep.subr.bf16.mxu0 %v3321_v13  ;;  %2917 = vmatprep.subr.bf16.mxu1 %v3322_v14 }
 0x4d2   :  { %2428 = vmatpush1.bf16.msra.mxu0 %v3319_v15  ;;  %2918 = vmatpush3.bf16.msra.mxu1 %v3323_v16 }
 0x4d3   :  { %2429 = vmatprep.subr.bf16.mxu0 %v3326_v17  ;;  %2919 = vmatprep.subr.bf16.mxu1 %v3327_v18 }
 0x4d6   :  { %2430 = vmatpush1.bf16.msra.mxu0 %v3324_v19  ;;  %2920 = vmatpush3.bf16.msra.mxu1 %v3328_v20 }
 0x4d7   :  { %2431 = vmatprep.subr.bf16.mxu0 %v3331_v21 }
 0x4d9   :  { %2489 = vmatmul.mubr.bf16.vlgmr.msra.gmra.mxu1 %v4309_v55 }
 0x4da   :  { %2432 = vmatpush2.bf16.msra.mxu0 %v3329_v22 }
 0x4db   :  { %2433 = vmatprep.subr.bf16.mxu0 %v3334_v23 }
 0x4de   :  { %2434 = vmatpush2.bf16.msra.mxu0 %v3332_v24 }
 0x4df   :  { %2435 = vmatprep.subr.bf16.mxu0 %v3337_v2  ;;  %v1740_v2 = vsub.s32 4, %v3938_v42 }
 0x4e2   :  { %2436 = vmatpush2.bf16.msra.mxu0 %v3335_v25  ;;  %v1744_v25 = vsub.s32 5, %v3938_v42 }
 0x4e3   :  { %2437 = vmatprep.subr.bf16.mxu0 %v3340_v26  ;;  %v1741_v26 = vrot.slane %v4450_v38, %v1740_v2 }
 0x4e6   :  { %2438 = vmatpush2.bf16.msra.mxu0 %v3338_v27  ;;  %v1745_v27 = vrot.slane %v4450_v38, %v1744_v25 }
 0x4e7   :  { %2439 = vmatprep.subr.bf16.mxu0 %v3343_v28 }
 0x4ea   :  { %2440 = vmatpush2.bf16.msra.mxu0 %v3341_v29 }
 0x4eb   :  { %2441 = vmatprep.subr.bf16.mxu0 %v3346_v30 }
 0x4ee   :  { %2442 = vmatpush2.bf16.msra.mxu0 %v3344_v31 }
 0x4ef   :  { %2443 = vmatprep.subr.bf16.mxu0 %v3349_v34 }
 0x4f2   :  { %2444 = vmatpush2.bf16.msra.mxu0 %v3347_v35 }
 0x4f3   :  { %2445 = vmatprep.subr.bf16.mxu0 %v3352_v36 }
 0x4f6   :  { %2446 = vmatpush2.bf16.msra.mxu0 %v3350_v37 }
 0x4f9   :  { %2448 = vmatmul.mubr.bf16.vlgmr.msra.gmra.mxu0 %v4309_v55 }
 0x579   :  { %v2367_v46 = vpop.f32.mrf.mxu0  ;;  %v2408_v47 = vpop.f32.mrf.mxu1 }
 0x57a   :  { %v2368_v48 = vadd.f32 %v2367_v46, %v1725_v39  ;;  %v2409_v49 = vadd.f32 %v2408_v47, %v1733_v40 }
 0x57b   :  { %v2369_v50 = vpop.f32.mrf.mxu0  ;;  %v2410_v51 = vpop.f32.mrf.mxu1 }
 0x57c   :  { %v2496_v52 = vsub.f32 0.0, %v2368_v48  ;;  %v2498_v53 = vsub.f32 0.0, %v2409_v49  ;;  %v2370_v43 = vadd.f32 %v2369_v50, %v1729_v41  ;;  %v2411_v54 = vadd.f32 %v2410_v51, %v1737_v44 }
 0x57d   :  { %v2371_v55 = vpop.f32.mrf.mxu0  ;;  %v2412_v56 = vpop.f32.mrf.mxu1 }
 0x57e   :  { %v2503_v33 = vmul.f32 1.442695, %v2496_v52  ;;  %v2507_v57 = vmul.f32 1.442695, %v2498_v53  ;;  %v2497_v58 = vsub.f32 0.0, %v2370_v43  ;;  %v2499_v45 = vsub.f32 0.0, %v2411_v54 }
 0x57f   :  { %v2372_v59 = vpop.f32.mrf.mxu0  ;;  %v2413_v60 = vpop.f32.mrf.mxu1 }
 0x580   :  { %3355 = vpow2.f32 %v2503_v33  ;;  %v2505_v32 = vmul.f32 1.442695, %v2497_v58  ;;  %v2509_v61 = vmul.f32 1.442695, %v2499_v45 }
 0x581   :  { %3357 = vpow2.f32 %v2507_v57 }
 0x582   :  { %3359 = vpow2.f32 %v2505_v32 }
 0x583   :  { %3361 = vpow2.f32 %v2509_v61 }
 0x58d   :  { %v3356_v62 = vpop.eup %3355 }
 0x58e   :  { %v3358_v63 = vpop.eup %3357  ;;  %v2517_v0 = vadd.f32 1.0, %v3356_v62 }
 0x58f   :  { %v3360_v1 = vpop.eup %3359  ;;  %v2519_v3 = vadd.f32 1.0, %v3358_v63 }
 0x590   :  { %v3362_v4 = vpop.eup %3361  ;;  %3363 = vrcp.f32 %v2517_v0  ;;  %v2518_v5 = vadd.f32 1.0, %v3360_v1 }
 0x591   :  { %3365 = vrcp.f32 %v2519_v3  ;;  %v2520_v6 = vadd.f32 1.0, %v3362_v4 }
 0x592   :  { %3367 = vrcp.f32 %v2518_v5 }
 0x593   :  { %3369 = vrcp.f32 %v2520_v6 }
 0x599   :  { %v2921_v8 = vpop.f32.mrf.mxu1 }
 0x59b   :  { %v2922_v10 = vpop.f32.mrf.mxu1 }
 0x59c   :  { %v2923_v11 = vadd.f32 %v2922_v10, %v2921_v8 }
 0x59d   :  { %v3364_v12 = vpop.eup %3363  ;;  %v2924_v13 = vpop.f32.mrf.mxu1 }
 0x59e   :  { %v3366_v14 = vpop.eup %3365  ;;  %v2491_v15 = vadd.f32 %v2923_v11, %v1749_v9 }
 0x59f   :  { %v3368_v16 = vpop.eup %3367  ;;  %v2925_v17 = vpop.f32.mrf.mxu1 }
 0x5a0   :  { %v3370_v18 = vpop.eup %3369  ;;  %v2502_v19 = vsub.f32 0.0, %v2491_v15  ;;  %v2879_v20 = vpack.c.bf16 %v3368_v16, %v3364_v12 }
 0x5a1   :  { %v2880_v21 = vpack.c.bf16 %v3370_v18, %v3366_v14 }
 0x5a2   :  { %v2515_v22 = vmul.f32 1.442695, %v2502_v19  ;;  %2560 = vst [vmem:[#allocation2] sm:$0xff] %v2879_v20 }
 0x5a3   :  { %2561 = vst [vmem:[#allocation2 + $0x8] sm:$0xff] %v2880_v21 }
 0x5a4   :  { %3371 = vpow2.f32 %v2515_v22 }
 0x5b1   :  { %v3372_v23 = vpop.eup %3371 }
 0x5b2   :  { %v2523_v24 = vadd.f32 1.0, %v3372_v23 }
 0x5b4   :  { %3373 = vrcp.f32 %v2523_v24 }
 0x5b9   :  { %v2449_v28 = vpop.f32.mrf.mxu0 }
 0x5ba   :  { %v2450_v29 = vadd.f32 %v2449_v28, %v1741_v26 }
 0x5bb   :  { %v2451_v30 = vpop.f32.mrf.mxu0 }
 0x5bc   :  { %v2500_v31 = vsub.f32 0.0, %v2450_v29  ;;  %v2452_v34 = vadd.f32 %v2451_v30, %v1745_v27 }
 0x5bd   :  { %v2453_v35 = vpop.f32.mrf.mxu0 }
 0x5be   :  { %v2511_v36 = vmul.f32 1.442695, %v2500_v31  ;;  %v2501_v37 = vsub.f32 0.0, %v2452_v34 }
 0x5bf   :  { %v2454_v39 = vpop.f32.mrf.mxu0 }
 0x5c0   :  { %3375 = vpow2.f32 %v2511_v36  ;;  %v2513_v40 = vmul.f32 1.442695, %v2501_v37 }
 0x5c1   :  { %v3374_v41 = vpop.eup %3373 }
 0x5c2   :  { %3377 = vpow2.f32 %v2513_v40  ;;  %v2882_v44 = vpack.c.bf16 %v3374_v41, %v3374_v41 }
 0x5c4   :  { %2564 = vst.msk [vmem:[#allocation2 + $0x18] sm:$0xf] %vm2563_vm1, %v2882_v44 }
 0x5cd   :  { %v3376_v42 = vpop.eup %3375 }
 0x5ce   :  { %v2521_v46 = vadd.f32 1.0, %v3376_v42 }
 0x5cf   :  { %v3378_v47 = vpop.eup %3377 }
 0x5d0   :  { %v2522_v38 = vadd.f32 1.0, %v3378_v47  ;;  %3379 = vrcp.f32 %v2521_v46 }
 0x5d2   :  { %3381 = vrcp.f32 %v2522_v38 }
 0x5dd   :  { %v3380_v48 = vpop.eup %3379 }
 0x5df   :  { %v3382_v49 = vpop.eup %3381 }
 0x5e0   :  { %v2881_v50 = vpack.c.bf16 %v3382_v49, %v3380_v48 }
 0x5e2   :  { %2562 = vst [vmem:[#allocation2 + $0x10] sm:$0xff] %v2881_v50 }
 0x5e3   :  { %3394 = shalt.err (!%p3391_p4)
}
 0x5e4   :  { %2574 = dma.vmem_to_hbm [thread:$0]  %s2572_s13, 448, %s4485_s14, [#allocation3]  }
 0x5e5   :  { %3403 = dma.done.wait [#allocation3], 448  }
 0x5e6   :  { %3404 = vsyncadd [#allocation3], 4294966848 }
 0x5e7   :  { %2582 = vsyncpa [#allocation3], 1 }

</bundles_post_ra>
